<compile_context>
chip_gen: v7x
topology: tpu7x:2x2x1
jax: 0.10.0
libtpu: 0.0.40
codegen_flags: <defaults>
</compile_context>

<pallas_src>
import functools

import jax
import jax.numpy as jnp
from jax.experimental import pallas as pl
from jax.experimental.pallas import tpu as pltpu

D_IN = 28 * 28        # 784 (streamed as-is; Mosaic pads K internally)
H_PAD = 128           # hidden width padded 64 -> 128 (lane-dense)
N_OUT = 10
N_OUT_PAD = 128       # lane-dense logits
NEG_BIAS = -1e30      # pad-logit bias: exp(pad - max) == 0 -> exact log_softmax


def _round_up(x, m):
    return ((x + m - 1) // m) * m


def mlp_kernel(x_ref, w1_ref, w23_ref, w4_ref, b_ref, o_ref):
    # fc1 + relu  (bf16 operands on the MXU, f32 accumulate / elementwise)
    x = x_ref[...].astype(jnp.bfloat16)          # no-op when x is already bf16
    h = jnp.dot(x, w1_ref[...], preferred_element_type=jnp.float32)
    h = jnp.maximum(h + b_ref[0:1, :], 0.0)
    # fc2 + relu
    h = jnp.dot(h.astype(jnp.bfloat16), w23_ref[0],
                preferred_element_type=jnp.float32)
    h = jnp.maximum(h + b_ref[1:2, :], 0.0)
    # fc3 + relu
    h = jnp.dot(h.astype(jnp.bfloat16), w23_ref[1],
                preferred_element_type=jnp.float32)
    h = jnp.maximum(h + b_ref[2:3, :], 0.0)
    # fc4 (logits padded to 128 lanes; pad lanes carry a -1e30 bias)
    logits = jnp.dot(h.astype(jnp.bfloat16), w4_ref[...],
                     preferred_element_type=jnp.float32)
    logits = logits + b_ref[3:4, :]
    # log_softmax over the last axis (pad lanes contribute exp(...) == 0)
    m = jnp.max(logits, axis=-1, keepdims=True)
    shifted = logits - m
    lse = jnp.log(jnp.sum(jnp.exp(shifted), axis=-1, keepdims=True))
    o_ref[...] = shifted - lse


def pack_params(params):
    """Pad to lane-aligned shapes, cast weights to bf16, fuse small arrays."""
    w1 = jnp.zeros((D_IN, H_PAD), jnp.bfloat16)
    w1 = w1.at[:, :64].set(params["w1"].astype(jnp.bfloat16))

    w23 = jnp.zeros((2, H_PAD, H_PAD), jnp.bfloat16)
    w23 = w23.at[0, :64, :64].set(params["w2"].astype(jnp.bfloat16))
    w23 = w23.at[1, :64, :64].set(params["w3"].astype(jnp.bfloat16))

    w4 = jnp.zeros((H_PAD, N_OUT_PAD), jnp.bfloat16)
    w4 = w4.at[:64, :N_OUT].set(params["w4"].astype(jnp.bfloat16))

    b = jnp.zeros((4, N_OUT_PAD), jnp.float32)
    b = b.at[0, :64].set(params["b1"][0])
    b = b.at[1, :64].set(params["b2"][0])
    b = b.at[2, :64].set(params["b3"][0])
    b = b.at[3, :].set(NEG_BIAS)
    b = b.at[3, :N_OUT].set(params["b4"][0])

    return dict(w1=w1, w23=w23, w4=w4, b=b)


@functools.partial(jax.jit, static_argnames=("tb",))
def net_forward(x, packed, *, tb=512):
    """x: (B, 784) float32 or bfloat16.  packed: output of pack_params."""
    B = x.shape[0]
    # Big tiles amortize per-grid-step overhead (single-TC v5e/v6e), but keep
    # the grid at >= 2 steps when B allows so v7x's 2 TensorCores both work.
    tb_eff = min(tb, max(8, _round_up(pl.cdiv(B, 2), 8)))
    grid = (pl.cdiv(B, tb_eff),)

    w1, w23, w4, b = packed["w1"], packed["w23"], packed["w4"], packed["b"]

    def resident(shape):
        # Same block index every step -> stays VMEM-resident (no re-DMA).
        return pl.BlockSpec(shape, lambda i: tuple(0 for _ in shape))

    flops = 2 * B * (D_IN * H_PAD + 2 * H_PAD * H_PAD + H_PAD * N_OUT_PAD)
    bytes_accessed = int(
        x.size * x.dtype.itemsize
        + sum(a.size * a.dtype.itemsize for a in (w1, w23, w4, b))
        + B * N_OUT_PAD * 4
    )

    out = pl.pallas_call(
        mlp_kernel,
        out_shape=jax.ShapeDtypeStruct((B, N_OUT_PAD), jnp.float32),
        grid_spec=pltpu.PrefetchScalarGridSpec(
            num_scalar_prefetch=0,
            grid=grid,
            in_specs=[
                # x: pipelined over the batch; last dim = full 784 (legal).
                pl.BlockSpec((tb_eff, D_IN), lambda i: (i, 0)),
                resident((D_IN, H_PAD)),
                resident((2, H_PAD, H_PAD)),
                resident((H_PAD, N_OUT_PAD)),
                resident((4, N_OUT_PAD)),
            ],
            out_specs=pl.BlockSpec((tb_eff, N_OUT_PAD), lambda i: (i, 0)),
        ),
        compiler_params=pltpu.CompilerParams(
            dimension_semantics=("parallel",),
            vmem_limit_bytes=16 << 20,
        ),
        cost_estimate=pl.CostEstimate(
            flops=flops,
            transcendentals=B * N_OUT_PAD,
            bytes_accessed=bytes_accessed,
        ),
    )(x, w1, w23, w4, b)

    return out[:, :N_OUT]


def init_params(key):
    """Mirror nn.Linear default init; weights stored (in, out) == W.T."""
    dims = [(D_IN, 64), (64, 64), (64, 64), (64, N_OUT)]
    params = {}
    keys = jax.random.split(key, 2 * len(dims))
    for i, (din, dout) in enumerate(dims):
        bound = 1.0 / (din ** 0.5)
        params[f"w{i + 1}"] = jax.random.uniform(
            keys[2 * i], (din, dout), jnp.float32, -bound, bound)
        params[f"b{i + 1}"] = jax.random.uniform(
            keys[2 * i + 1], (1, dout), jnp.float32, -bound, bound)
    return params


def reference_forward(x, params):
    """Same math / same bf16-operand, f32-accumulate precision as the kernel."""
    def lin(h, w, b):
        return jnp.dot(h.astype(jnp.bfloat16), w.astype(jnp.bfloat16),
                       preferred_element_type=jnp.float32) + b
    h = jnp.maximum(lin(x, params["w1"], params["b1"]), 0.0)
    h = jnp.maximum(lin(h, params["w2"], params["b2"]), 0.0)
    h = jnp.maximum(lin(h, params["w3"], params["b3"]), 0.0)
    logits = lin(h, params["w4"], params["b4"])
    return jax.nn.log_softmax(logits, axis=1)


if __name__ == "__main__":
    key = jax.random.PRNGKey(0)
    pkey, xkey = jax.random.split(key)
    params = init_params(pkey)
    packed = pack_params(params)

    B = 512
    x = jax.random.normal(xkey, (B, D_IN), jnp.float32)
    # Producer-side bf16: halves the dominant x HBM->VMEM stream.  The MXU
    # operands are bf16 either way, so numerics match the f32-input path.
    x_bf16 = x.astype(jnp.bfloat16)

    out = net_forward(x_bf16, packed)
    jax.block_until_ready(out)

    ref = reference_forward(x, params)
    assert out.shape == (B, N_OUT)
    assert jnp.allclose(out, ref, atol=5e-3, rtol=5e-3), "mismatch vs reference"
    # log-probs should (approximately) normalize
    assert jnp.allclose(jnp.sum(jnp.exp(out), axis=-1), 1.0, atol=1e-3)
    print("KERNEL_OK")
</pallas_src>

<mosaic_0001>
module attributes {stable_mosaic.version = 11 : i64} {
  func.func @mlp_kernel(%arg0: i32, %arg1: memref<256x784xbf16, #tpu.memory_space<vmem>>, %arg2: memref<784x128xbf16, #tpu.memory_space<vmem>>, %arg3: memref<2x128x128xbf16, #tpu.memory_space<vmem>>, %arg4: memref<128x128xbf16, #tpu.memory_space<vmem>>, %arg5: memref<4x128xf32, #tpu.memory_space<vmem>>, %arg6: memref<256x128xf32, #tpu.memory_space<vmem>>) attributes {dimension_semantics = [#tpu.dimension_semantics<parallel>], iteration_bounds = array<i64: 2>, scalar_prefetch = 0 : i64, scratch_operands = 0 : i64, tpu.core_type = #tpu.core_type<tc>, window_params = [{transform_indices = @transform_0, window_bounds = array<i64: 256, 784>}, {pipeline_mode = #tpu.pipeline_mode<synchronous>, transform_indices = @transform_1, window_bounds = array<i64: 784, 128>}, {pipeline_mode = #tpu.pipeline_mode<synchronous>, transform_indices = @transform_2, window_bounds = array<i64: 2, 128, 128>}, {pipeline_mode = #tpu.pipeline_mode<synchronous>, transform_indices = @transform_3, window_bounds = array<i64: 128, 128>}, {pipeline_mode = #tpu.pipeline_mode<synchronous>, transform_indices = @transform_4, window_bounds = array<i64: 4, 128>}, {transform_indices = @transform_5, window_bounds = array<i64: 256, 128>}]} {
    %c0 = arith.constant 0 : index
    %c0_0 = arith.constant 0 : index
    %0 = vector.load %arg1[%c0, %c0_0] : memref<256x784xbf16, #tpu.memory_space<vmem>>, vector<256x784xbf16>
    %c0_1 = arith.constant 0 : index
    %c0_2 = arith.constant 0 : index
    %1 = vector.load %arg2[%c0_1, %c0_2] : memref<784x128xbf16, #tpu.memory_space<vmem>>, vector<784x128xbf16>
    %cst = arith.constant dense<0.000000e+00> : vector<256x128xf32>
    %2 = tpu.matmul %0, %1, %cst {dimension_numbers = #tpu.dot_dimension_numbers<[1], [0], [0], [1], [0, 0, 1, 1], [], []>} : vector<256x784xbf16>, vector<784x128xbf16>, vector<256x128xf32> -> vector<256x128xf32>
    %c0_3 = arith.constant 0 : index
    %c0_4 = arith.constant 0 : index
    %3 = vector.load %arg5[%c0_3, %c0_4] : memref<4x128xf32, #tpu.memory_space<vmem>>, vector<1x128xf32>
    %4 = vector.broadcast %3 : vector<1x128xf32> to vector<256x128xf32>
    %5 = arith.addf %2, %4 : vector<256x128xf32>
    %cst_5 = arith.constant 0.000000e+00 : f32
    %6 = vector.broadcast %cst_5 : f32 to vector<256x128xf32>
    %7 = arith.maximumf %5, %6 : vector<256x128xf32>
    %8 = arith.truncf %7 : vector<256x128xf32> to vector<256x128xbf16>
    %c0_6 = arith.constant 0 : index
    %c0_7 = arith.constant 0 : index
    %c0_8 = arith.constant 0 : index
    %9 = vector.load %arg3[%c0_6, %c0_7, %c0_8] : memref<2x128x128xbf16, #tpu.memory_space<vmem>>, vector<1x128x128xbf16>
    %10 = vector.shape_cast %9 : vector<1x128x128xbf16> to vector<128x128xbf16>
    %cst_9 = arith.constant dense<0.000000e+00> : vector<256x128xf32>
    %11 = tpu.matmul %8, %10, %cst_9 {dimension_numbers = #tpu.dot_dimension_numbers<[1], [0], [0], [1], [0, 0, 1, 1], [], []>} : vector<256x128xbf16>, vector<128x128xbf16>, vector<256x128xf32> -> vector<256x128xf32>
    %c1 = arith.constant 1 : index
    %c0_10 = arith.constant 0 : index
    %12 = vector.load %arg5[%c1, %c0_10] : memref<4x128xf32, #tpu.memory_space<vmem>>, vector<1x128xf32>
    %13 = vector.broadcast %12 : vector<1x128xf32> to vector<256x128xf32>
    %14 = arith.addf %11, %13 : vector<256x128xf32>
    %cst_11 = arith.constant 0.000000e+00 : f32
    %15 = vector.broadcast %cst_11 : f32 to vector<256x128xf32>
    %16 = arith.maximumf %14, %15 : vector<256x128xf32>
    %17 = arith.truncf %16 : vector<256x128xf32> to vector<256x128xbf16>
    %c1_12 = arith.constant 1 : index
    %c0_13 = arith.constant 0 : index
    %c0_14 = arith.constant 0 : index
    %18 = vector.load %arg3[%c1_12, %c0_13, %c0_14] : memref<2x128x128xbf16, #tpu.memory_space<vmem>>, vector<1x128x128xbf16>
    %19 = vector.shape_cast %18 : vector<1x128x128xbf16> to vector<128x128xbf16>
    %cst_15 = arith.constant dense<0.000000e+00> : vector<256x128xf32>
    %20 = tpu.matmul %17, %19, %cst_15 {dimension_numbers = #tpu.dot_dimension_numbers<[1], [0], [0], [1], [0, 0, 1, 1], [], []>} : vector<256x128xbf16>, vector<128x128xbf16>, vector<256x128xf32> -> vector<256x128xf32>
    %c2 = arith.constant 2 : index
    %c0_16 = arith.constant 0 : index
    %21 = vector.load %arg5[%c2, %c0_16] : memref<4x128xf32, #tpu.memory_space<vmem>>, vector<1x128xf32>
    %22 = vector.broadcast %21 : vector<1x128xf32> to vector<256x128xf32>
    %23 = arith.addf %20, %22 : vector<256x128xf32>
    %cst_17 = arith.constant 0.000000e+00 : f32
    %24 = vector.broadcast %cst_17 : f32 to vector<256x128xf32>
    %25 = arith.maximumf %23, %24 : vector<256x128xf32>
    %26 = arith.truncf %25 : vector<256x128xf32> to vector<256x128xbf16>
    %c0_18 = arith.constant 0 : index
    %c0_19 = arith.constant 0 : index
    %27 = vector.load %arg4[%c0_18, %c0_19] : memref<128x128xbf16, #tpu.memory_space<vmem>>, vector<128x128xbf16>
    %cst_20 = arith.constant dense<0.000000e+00> : vector<256x128xf32>
    %28 = tpu.matmul %26, %27, %cst_20 {dimension_numbers = #tpu.dot_dimension_numbers<[1], [0], [0], [1], [0, 0, 1, 1], [], []>} : vector<256x128xbf16>, vector<128x128xbf16>, vector<256x128xf32> -> vector<256x128xf32>
    %c3 = arith.constant 3 : index
    %c0_21 = arith.constant 0 : index
    %29 = vector.load %arg5[%c3, %c0_21] : memref<4x128xf32, #tpu.memory_space<vmem>>, vector<1x128xf32>
    %30 = vector.broadcast %29 : vector<1x128xf32> to vector<256x128xf32>
    %31 = arith.addf %28, %30 : vector<256x128xf32>
    %cst_22 = arith.constant dense<0xFF800000> : vector<256xf32>
    %32 = vector.multi_reduction <maximumf>, %31, %cst_22 [1] : vector<256x128xf32> to vector<256xf32>
    %33 = vector.shape_cast %32 : vector<256xf32> to vector<256x1xf32>
    %34 = vector.broadcast %33 : vector<256x1xf32> to vector<256x128xf32>
    %35 = arith.subf %31, %34 : vector<256x128xf32>
    %36 = math.exp %35 : vector<256x128xf32>
    %cst_23 = arith.constant dense<0.000000e+00> : vector<256xf32>
    %37 = vector.multi_reduction <add>, %36, %cst_23 [1] : vector<256x128xf32> to vector<256xf32>
    %38 = vector.shape_cast %37 : vector<256xf32> to vector<256x1xf32>
    %39 = math.log %38 : vector<256x1xf32>
    %40 = vector.broadcast %39 : vector<256x1xf32> to vector<256x128xf32>
    %41 = arith.subf %35, %40 : vector<256x128xf32>
    %c0_24 = arith.constant 0 : index
    %c0_25 = arith.constant 0 : index
    %42 = vector.load %arg6[%c0_24, %c0_25] : memref<256x128xf32, #tpu.memory_space<vmem>>, vector<256x128xf32>
    tpu.vector_store %arg6[%c0_24, %c0_25], %41 {strides = array<i32>} : memref<256x128xf32, #tpu.memory_space<vmem>>, vector<256x128xf32>,
    return
  }
  func.func @transform_0(%arg0: i32) -> (i32, i32) {
    %c0_i32 = arith.constant 0 : i32
    %c0_i32_0 = arith.constant 0 : i32
    return %arg0, %c0_i32 : i32, i32
  }
  func.func @transform_1(%arg0: i32) -> (i32, i32) {
    %c0_i32 = arith.constant 0 : i32
    %c0_i32_0 = arith.constant 0 : i32
    %c0_i32_1 = arith.constant 0 : i32
    return %c0_i32, %c0_i32_0 : i32, i32
  }
  func.func @transform_2(%arg0: i32) -> (i32, i32, i32) {
    %c0_i32 = arith.constant 0 : i32
    %c0_i32_0 = arith.constant 0 : i32
    %c0_i32_1 = arith.constant 0 : i32
    %c0_i32_2 = arith.constant 0 : i32
    return %c0_i32, %c0_i32_0, %c0_i32_1 : i32, i32, i32
  }
  func.func @transform_3(%arg0: i32) -> (i32, i32) {
    %c0_i32 = arith.constant 0 : i32
    %c0_i32_0 = arith.constant 0 : i32
    %c0_i32_1 = arith.constant 0 : i32
    return %c0_i32, %c0_i32_0 : i32, i32
  }
  func.func @transform_4(%arg0: i32) -> (i32, i32) {
    %c0_i32 = arith.constant 0 : i32
    %c0_i32_0 = arith.constant 0 : i32
    %c0_i32_1 = arith.constant 0 : i32
    return %c0_i32, %c0_i32_0 : i32, i32
  }
  func.func @transform_5(%arg0: i32) -> (i32, i32) {
    %c0_i32 = arith.constant 0 : i32
    %c0_i32_0 = arith.constant 0 : i32
    return %arg0, %c0_i32 : i32, i32
  }
}

</mosaic_0001>

<bundles_post_ra>
// kernel: net_forward.1
= control target key start
LH: loop header
LB: loop body
LE: loop exit
PB: predicated region body
PF: predicated region fallthrough
CT: control target
= control target key end

     0   :  { %s4496_s18 = smov 0   ;;  %s5462_s0 = inlined_call_operand.vmem [shape: bf16[512,784], index: 0, kind: input, shape index: {}]   ;;  %s5463_s1 = inlined_call_operand.vmem [shape: bf16[784,128], index: 1, kind: input, shape index: {}]   ;;  %s5464_s2 = inlined_call_operand.vmem [shape: bf16[2,128,128], index: 2, kind: input, shape index: {}]   ;;  %s5465_s3 = inlined_call_operand.vmem [shape: bf16[128,128], index: 3, kind: input, shape index: {}]   ;;  %s5466_s4 = inlined_call_operand.vmem [shape: f32[4,128], index: 4, kind: input, shape index: {}]   ;;  %s5467_s5 = inlined_call_operand.vmem [shape: f32[512,128], index: 5, kind: output, shape index: {}]  }
   0x1 LB: > { %s3253_s19 = sadd.s32 4294967295, %s4464_s18   ;;  %p3257_p0 = scmp.ge.s32.totalorder %s4464_s18, 1  ;;  %s4464_s18 = sphi %s4496_s18, %s15_s18  }
   0x2   : > { %p189_p1 = scmp.lt.s32.totalorder %s4464_s18, 3 }
   0x4   : > { %p190_p2 = pnand %p3257_p0, %p189_p1 }
   0x5   : > { %v4097_v0 = vld [vmem:[%s5463_s1 + $0x40] sm:$0xff] (!%p190_p2)   ;;  %v4101_v4 = vld [vmem:[%s5463_s1 + $0x48] sm:$0xff] (!%p190_p2)   ;;  %v4105_v8 = vld [vmem:[%s5463_s1 + $0x50] sm:$0xff] (!%p190_p2)   ;;  %s3258_s25 = sshll.u32 (!%p190_p2), %s3253_s19, 5  ;;  %vm1317_vm0 = vcmask (!%p190_p2), 130048  }
   0x6   : > { %193 = sbr.rel (%p190_p2) target bundleno = 1491 (0x5d3), region = 40  ;;  %v4098_v1 = vld [vmem:[%s5463_s1] sm:$0xff] (!%p190_p2)   ;;  %3485 = vmatprep.subr.bf16.mxu0 (!%p190_p2), %v4097_v0  ;;  %v4102_v5 = vld [vmem:[%s5463_s1 + $0x8] sm:$0xff] (!%p190_p2)   ;;  %v4106_v9 = vld [vmem:[%s5463_s1 + $0x10] sm:$0xff] (!%p190_p2)   ;;  %p219_p3 = scmp.lt.s32.totalorder (!%p190_p2), %s3258_s25, 63 }
   0x7   : > { %v4099_v2 = vld [vmem:[%s5463_s1 + $0xc0] sm:$0xff] (!%p190_p2)   ;;  %3486 = vmatpush3.bf16.msra.mxu0 (!%p190_p2), %v4098_v1  ;;  %v4103_v6 = vld [vmem:[%s5463_s1 + $0xc8] sm:$0xff] (!%p190_p2)   ;;  %v4107_v10 = vld [vmem:[%s5463_s1 + $0xd0] sm:$0xff] (!%p190_p2)  }
   0x8   : > { %v4100_v3 = vld [vmem:[%s5463_s1 + $0x80] sm:$0xff] (!%p190_p2)   ;;  %3597 = vmatprep.subr.bf16.mxu1 (!%p190_p2), %v4099_v2  ;;  %3487 = vmatprep.subr.bf16.mxu0 (!%p190_p2), %v4101_v4  ;;  %v4104_v7 = vld [vmem:[%s5463_s1 + $0x88] sm:$0xff] (!%p190_p2)   ;;  %v4108_v11 = vld [vmem:[%s5463_s1 + $0x90] sm:$0xff] (!%p190_p2)  }
   0x9   : > { %3598 = vmatpush3.bf16.msra.mxu1 (!%p190_p2), %v4100_v3  ;;  %v4109_v12 = vld [vmem:[%s5463_s1 + $0x58] sm:$0xff] (!%p190_p2)   ;;  %v4113_v16 = vld [vmem:[%s5463_s1 + $0x60] sm:$0xff] (!%p190_p2)   ;;  %v4117_v20 = vld [vmem:[%s5463_s1 + $0x68] sm:$0xff] (!%p190_p2)  }
   0xa   : > { %3599 = vmatprep.subr.bf16.mxu1 (!%p190_p2), %v4103_v6  ;;  %v4110_v13 = vld [vmem:[%s5463_s1 + $0x18] sm:$0xff] (!%p190_p2)   ;;  %v4114_v17 = vld [vmem:[%s5463_s1 + $0x20] sm:$0xff] (!%p190_p2)   ;;  %v4118_v21 = vld [vmem:[%s5463_s1 + $0x28] sm:$0xff] (!%p190_p2)  }
   0xb   : > { %3488 = vmatpush3.bf16.msra.mxu0 (!%p190_p2), %v4102_v5  ;;  %v4111_v14 = vld [vmem:[%s5463_s1 + $0xd8] sm:$0xff] (!%p190_p2)   ;;  %v4115_v18 = vld [vmem:[%s5463_s1 + $0xe0] sm:$0xff] (!%p190_p2)   ;;  %v4119_v22 = vld [vmem:[%s5463_s1 + $0xe8] sm:$0xff] (!%p190_p2)  }
   0xc   : > { %3489 = vmatprep.subr.bf16.mxu0 (!%p190_p2), %v4105_v8  ;;  %v4112_v15 = vld [vmem:[%s5463_s1 + $0x98] sm:$0xff] (!%p190_p2)   ;;  %v4116_v19 = vld [vmem:[%s5463_s1 + $0xa0] sm:$0xff] (!%p190_p2)   ;;  %v4120_v23 = vld [vmem:[%s5463_s1 + $0xa8] sm:$0xff] (!%p190_p2)  }
   0xd   : > { %3600 = vmatpush3.bf16.msra.mxu1 %v4104_v7  ;;  %s5469_s25 = smov (!%p219_p3, %s3258_s25), 63  ;;  %v4121_v24 = vld [vmem:[%s5463_s1 + $0x70] sm:$0xff]   ;;  %v4125_v28 = vld [vmem:[%s5463_s1 + $0x78] sm:$0xff]   ;;  %v4132_v34 = vld [vmem:[%s5463_s1 + $0x140] sm:$0xff]  }
   0xe   : > { %3601 = vmatprep.subr.bf16.mxu1 %v4107_v10  ;;  %s4088_s24 = smul.u32 28, %s5469_s25  ;;  %v4122_v25 = vld [vmem:[%s5463_s1 + $0x30] sm:$0xff]   ;;  %v4126_v29 = vld [vmem:[%s5463_s1 + $0x38] sm:$0xff]   ;;  %v4136_v37 = vld [vmem:[%s5463_s1 + $0x100] sm:$0xff]   ;;  %s3261_s17 = sshll.u32 %s5469_s25, 3 }
   0xf   : > { %3490 = vmatpush3.bf16.msra.mxu0 %v4106_v9  ;;  %v4123_v26 = vld [vmem:[%s5463_s1 + $0xf0] sm:$0xff]   ;;  %v4127_v30 = vld [vmem:[%s5463_s1 + $0xf8] sm:$0xff]   ;;  %v4146_v42 = vld [vmem:[%s5463_s1 + $0x148] sm:$0xff]   ;;  %s5393_s22 = scalar_lea.vmem %s5467_s5, %s3261_s17 }
  0x10   : > { %3491 = vmatprep.subr.bf16.mxu0 %v4109_v12  ;;  %v4124_v27 = vld [vmem:[%s5463_s1 + $0xb0] sm:$0xff]   ;;  %s4599_s10 = scalar_lea.vmem %s5462_s0, %s4088_s24  ;;  %v4131_v33 = vld [vmem:[%s5463_s1 + $0xb8] sm:$0xff]   ;;  %v4149_v45 = vld [vmem:[%s5463_s1 + $0x108] sm:$0xff]  }
  0x11   : > { %3602 = vmatpush3.bf16.msra.mxu1 %v4108_v11  ;;  %v4128_v31 = vld [vmem:[%s4599_s10] ss:$28 sps:$4 sm:$0xff]   ;;  %v4133_v35 = vld [vmem:[%s4599_s10 + $0x8] ss:$28 sps:$4 sm:$0xff]   ;;  %v4139_v40 = vld [vmem:[%s4599_s10 + $0x38] ss:$28 sps:$4 sm:$0xff]  }
  0x12   : > { %3603 = vmatprep.subr.bf16.mxu1 %v4111_v14  ;;  %v4130_v32 = vld [vmem:[%s4599_s10 + $0x4] ss:$28 sps:$4 sm:$0xff]   ;;  %v4135_v36 = vld [vmem:[%s4599_s10 + $0xc] ss:$28 sps:$4 sm:$0xff]   ;;  %v4137_v38 = vld [vmem:[%s4599_s10 + $0x3c] ss:$28 sps:$4 sm:$0xff]  }
  0x13   : > { %3492 = vmatpush3.bf16.msra.mxu0 %v4110_v13  ;;  %1398 = vmatprep.mubr.bf16.mxu0 %v4130_v32  ;;  %v4140_v39 = vld [vmem:[%s4599_s10 + $0x44] ss:$28 sps:$4 sm:$0xff]   ;;  %v4143_v41 = vld [vmem:[%s4599_s10 + $0x74] ss:$28 sps:$4 sm:$0xff]   ;;  %v4147_v44 = vld [vmem:[%s4599_s10 + $0x7c] ss:$28 sps:$4 sm:$0xff]  }
  0x14   : > { %3493 = vmatprep.subr.bf16.mxu0 %v4113_v16  ;;  %1559 = vmatprep.mubr.bf16.mxu1 %v4135_v36  ;;  %v4142_v43 = vld [vmem:[%s4599_s10 + $0x40] ss:$28 sps:$4 sm:$0xff]   ;;  %v4145_v46 = vld [vmem:[%s4599_s10 + $0x70] ss:$28 sps:$4 sm:$0xff]   ;;  %v4150_v49 = vld [vmem:[%s4599_s10 + $0x78] ss:$28 sps:$4 sm:$0xff]  }
  0x15   : > { %3604 = vmatpush3.bf16.msra.mxu1 %v4112_v15  ;;  %v4151_v47 = vld [vmem:[%s4599_s10 + $0xac] ss:$28 sps:$4 sm:$0xff]   ;;  %v4160_v48 = vld [vmem:[%s5463_s1 + $0x150] sm:$0xff]   ;;  %v4157_v53 = vld [vmem:[%s4599_s10 + $0xe4] ss:$28 sps:$4 sm:$0xff]  }
  0x16   : > { %3605 = vmatprep.subr.bf16.mxu1 %v4115_v18  ;;  %v4163_v50 = vld [vmem:[%s5463_s1 + $0x110] sm:$0xff]   ;;  %v4153_v52 = vld [vmem:[%s4599_s10 + $0xa8] ss:$28 sps:$4 sm:$0xff]   ;;  %v4174_v54 = vld [vmem:[%s5463_s1 + $0x158] sm:$0xff]  }
  0x17   : > { %3494 = vmatpush3.bf16.msra.mxu0 %v4114_v17  ;;  %v4154_v51 = vld [vmem:[%s4599_s10 + $0xb4] ss:$28 sps:$4 sm:$0xff]   ;;  %v4177_v56 = vld [vmem:[%s5463_s1 + $0x118] sm:$0xff]   ;;  %v4161_v57 = vld [vmem:[%s4599_s10 + $0xec] ss:$28 sps:$4 sm:$0xff]  }
  0x18   : > { %3495 = vmatprep.subr.bf16.mxu0 %v4117_v20  ;;  %v4156_v55 = vld [vmem:[%s4599_s10 + $0xb0] ss:$28 sps:$4 sm:$0xff]   ;;  %v4159_v58 = vld [vmem:[%s4599_s10 + $0xe0] ss:$28 sps:$4 sm:$0xff]   ;;  %v4164_v61 = vld [vmem:[%s4599_s10 + $0xe8] ss:$28 sps:$4 sm:$0xff]  }
  0x19   : > { %3606 = vmatpush3.bf16.msra.mxu1 %v4116_v19  ;;  %v4188_v59 = vld [vmem:[%s5463_s1 + $0x160] sm:$0xff]   ;;  %v4165_v60 = vld [vmem:[%s4599_s10 + $0x11c] ss:$28 sps:$4 sm:$0xff]   ;;  %v4203_v2 = vld [vmem:[%s5463_s1 + $0x168] sm:$0xff]  }
  0x1a   : > { %3607 = vmatprep.subr.bf16.mxu1 %v4119_v22  ;;  %v4191_v62 = vld [vmem:[%s5463_s1 + $0x120] sm:$0xff]   ;;  %v4167_v1 = vld [vmem:[%s4599_s10 + $0x118] ss:$28 sps:$4 sm:$0xff]   ;;  %v4206_v4 = vld [vmem:[%s5463_s1 + $0x128] sm:$0xff]  }
  0x1b   : > { %3496 = vmatpush3.bf16.msra.mxu0 %v4118_v21  ;;  %v4193_v63 = vld [vmem:[%s5463_s1 + $0x180] sm:$0xff]   ;;  %v4171_v3 = vld [vmem:[%s4599_s10 + $0x154] ss:$28 sps:$4 sm:$0xff]   ;;  %v4175_v6 = vld [vmem:[%s4599_s10 + $0x15c] ss:$28 sps:$4 sm:$0xff]  }
  0x1c   : > { %3497 = vmatprep.subr.bf16.mxu0 %v4121_v24  ;;  %v4168_v0 = vld [vmem:[%s4599_s10 + $0x124] ss:$28 sps:$4 sm:$0xff]   ;;  %v4173_v7 = vld [vmem:[%s4599_s10 + $0x150] ss:$28 sps:$4 sm:$0xff]   ;;  %v4178_v11 = vld [vmem:[%s4599_s10 + $0x158] ss:$28 sps:$4 sm:$0xff]  }
  0x1d   : > { %3608 = vmatpush3.bf16.msra.mxu1 %v4120_v23  ;;  %v4170_v5 = vld [vmem:[%s4599_s10 + $0x120] ss:$28 sps:$4 sm:$0xff]   ;;  %v4217_v8 = vld [vmem:[%s5463_s1 + $0x170] sm:$0xff]   ;;  %v4179_v9 = vld [vmem:[%s4599_s10 + $0x18c] ss:$28 sps:$4 sm:$0xff]  }
  0x1e   : > { %3609 = vmatprep.subr.bf16.mxu1 %v4123_v26  ;;  %v4220_v10 = vld [vmem:[%s5463_s1 + $0x130] sm:$0xff]   ;;  %v4231_v13 = vld [vmem:[%s5463_s1 + $0x178] sm:$0xff]   ;;  %v4181_v14 = vld [vmem:[%s4599_s10 + $0x188] ss:$28 sps:$4 sm:$0xff]  }
  0x1f   : > { %3498 = vmatpush3.bf16.msra.mxu0 %v4122_v25  ;;  %v4182_v12 = vld [vmem:[%s4599_s10 + $0x194] ss:$28 sps:$4 sm:$0xff]   ;;  %v4185_v15 = vld [vmem:[%s4599_s10 + $0x1c4] ss:$28 sps:$4 sm:$0xff]   ;;  %v4234_v16 = vld [vmem:[%s5463_s1 + $0x138] sm:$0xff]  }
  0x20   : > { %3499 = vmatprep.subr.bf16.mxu0 %v4125_v28  ;;  %v4184_v17 = vld [vmem:[%s4599_s10 + $0x190] ss:$28 sps:$4 sm:$0xff]   ;;  %v4187_v19 = vld [vmem:[%s4599_s10 + $0x1c0] ss:$28 sps:$4 sm:$0xff]   ;;  %v4192_v21 = vld [vmem:[%s4599_s10 + $0x1c8] ss:$28 sps:$4 sm:$0xff]  }
  0x21   : > { %3610 = vmatpush3.bf16.msra.mxu1 %v4124_v27  ;;  %v4189_v18 = vld [vmem:[%s4599_s10 + $0x1cc] ss:$28 sps:$4 sm:$0xff]   ;;  %v4194_v20 = vld [vmem:[%s4599_s10 + $0x1fc] ss:$28 sps:$4 sm:$0xff]   ;;  %v4197_v22 = vld [vmem:[%s4599_s10 + $0x204] ss:$28 sps:$4 sm:$0xff]  }
  0x22   : > { %3611 = vmatprep.subr.bf16.mxu1 %v4127_v30  ;;  %v4196_v23 = vld [vmem:[%s4599_s10 + $0x1f8] ss:$28 sps:$4 sm:$0xff]   ;;  %v4199_v25 = vld [vmem:[%s4599_s10 + $0x200] ss:$28 sps:$4 sm:$0xff]   ;;  %v4202_v27 = vld [vmem:[%s4599_s10 + $0x230] ss:$28 sps:$4 sm:$0xff]  }
  0x23   : > { %3500 = vmatpush3.bf16.msra.mxu0 %v4126_v29  ;;  %v4200_v24 = vld [vmem:[%s4599_s10 + $0x234] ss:$28 sps:$4 sm:$0xff]   ;;  %v4204_v26 = vld [vmem:[%s4599_s10 + $0x23c] ss:$28 sps:$4 sm:$0xff]   ;;  %v4208_v28 = vld [vmem:[%s4599_s10 + $0x26c] ss:$28 sps:$4 sm:$0xff]  }
  0x24   : > { %3709 = vmatprep.subr.bf16.mxu0 %v4132_v34  ;;  %v4207_v29 = vld [vmem:[%s4599_s10 + $0x238] ss:$28 sps:$4 sm:$0xff]   ;;  %v4214_v32 = vld [vmem:[%s4599_s10 + $0x2a4] ss:$28 sps:$4 sm:$0xff]   ;;  %v4218_v34 = vld [vmem:[%s4599_s10 + $0x2ac] ss:$28 sps:$4 sm:$0xff]  }
  0x25   : > { %3612 = vmatpush3.bf16.msra.mxu1 %v4131_v33  ;;  %v4211_v30 = vld [vmem:[%s4599_s10 + $0x274] ss:$28 sps:$4 sm:$0xff]   ;;  %v4222_v36 = vld [vmem:[%s4599_s10 + $0x2dc] ss:$28 sps:$4 sm:$0xff]  }
  0x26   : > { %1399 = vmatmul.mubr.bf16.vlgmr.msra.gmra.mrb[0].mxu0 %v4128_v31  ;;  %3910 = vmatprep.subr.bf16.mxu1 %v4193_v63  ;;  %v4210_v31 = vld [vmem:[%s4599_s10 + $0x268] ss:$28 sps:$4 sm:$0xff]   ;;  %v4213_v33 = vld [vmem:[%s4599_s10 + $0x270] ss:$28 sps:$4 sm:$0xff]  }
  0x27   : > { %3710 = vmatpush3.bf16.msra.mxu0 %v4136_v37  ;;  %1406 = vmatprep.mubr.bf16.mxu0 %v4137_v38  ;;  %v4221_v37 = vld [vmem:[%s4599_s10 + $0x2a8] ss:$28 sps:$4 sm:$0xff]  }
  0x28   : > { %1560 = vmatmul.mubr.bf16.vlgmr.msra.gmra.mrb[0].mxu1 %v4133_v35  ;;  %3711 = vmatprep.subr.bf16.mxu0 %v4146_v42  ;;  %v4216_v35 = vld [vmem:[%s4599_s10 + $0x2a0] ss:$28 sps:$4 sm:$0xff]  }
  0x29   : > { %1567 = vmatprep.mubr.bf16.mxu1 %v4140_v39  ;;  %3911 = vmatpush3.bf16.msra.mxu1 %v4193_v63  ;;  %v4225_v38 = vld [vmem:[%s4599_s10 + $0x2e4] ss:$28 sps:$4 sm:$0xff]   ;;  %v4224_v39 = vld [vmem:[%s4599_s10 + $0x2d8] ss:$28 sps:$4 sm:$0xff]  }
  0x2a   : > { %v4232_v42 = vld [vmem:[%s4599_s10 + $0x31c] ss:$28 sps:$4 sm:$0xff]  }
  0x2b   : > { %3712 = vmatpush3.bf16.msra.mxu0 %v4149_v45  ;;  %v4235_v45 = vld [vmem:[%s4599_s10 + $0x318] ss:$28 sps:$4 sm:$0xff]  }
  0x2c   : > { %3713 = vmatprep.subr.bf16.mxu0 %v4160_v48  ;;  %v4244_v48 = vld [vmem:[%s4599_s10 + $0x14] ss:$28 sps:$4 sm:$0xff]  }
  0x2d   : > { %v4257_v63 = vld [vmem:[%s4599_s10 + $0xb8] ss:$28 sps:$4 sm:$0xff]  }
  0x2e   : > { %1407 = vmatmul.mubr.bf16.gmra.mrb[4].mxu0 %v4139_v40  ;;  %v4228_v40 = vld [vmem:[%s4599_s10 + $0x314] ss:$28 sps:$4 sm:$0xff]  }
  0x2f   : > { %1414 = vmatprep.mubr.bf16.mxu0 %v4143_v41  ;;  %3714 = vmatpush3.bf16.msra.mxu0 %v4163_v50  ;;  %v4227_v41 = vld [vmem:[%s4599_s10 + $0x2e0] ss:$28 sps:$4 sm:$0xff]   ;;  %v4245_v50 = vld [vmem:[%s4599_s10 + $0x18] ss:$28 sps:$4 sm:$0xff]  }
  0x30   : > { %1568 = vmatmul.mubr.bf16.gmra.mrb[4].mxu1 %v4142_v43  ;;  %3715 = vmatprep.subr.bf16.mxu0 %v4174_v54  ;;  %v4230_v43 = vld [vmem:[%s4599_s10 + $0x310] ss:$28 sps:$4 sm:$0xff]   ;;  %v4253_v54 = vld [vmem:[%s4599_s10 + $0x88] ss:$28 sps:$4 sm:$0xff]  }
  0x31   : > { %1575 = vmatprep.mubr.bf16.mxu1 %v4147_v44  ;;  %v4236_v44 = vld [vmem:[%s4599_s10 + $0x34c] ss:$28 sps:$4 sm:$0xff]  }
  0x33   : > { %3716 = vmatpush3.bf16.msra.mxu0 %v4177_v56  ;;  %v4250_v56 = vld [vmem:[%s4599_s10 + $0x84] ss:$28 sps:$4 sm:$0xff]  }
  0x34   : > { %3717 = vmatprep.subr.bf16.mxu0 %v4188_v59  ;;  %v4252_v59 = vld [vmem:[%s4599_s10 + $0x80] ss:$28 sps:$4 sm:$0xff]  }
  0x36   : > { %1415 = vmatmul.mubr.bf16.gmra.mrb[8].mxu0 %v4145_v46  ;;  %v4239_v46 = vld [vmem:[%s4599_s10 + $0x354] ss:$28 sps:$4 sm:$0xff]  }
  0x37   : > { %1422 = vmatprep.mubr.bf16.mxu0 %v4151_v47  ;;  %3718 = vmatpush3.bf16.msra.mxu0 %v4191_v62  ;;  %v4238_v47 = vld [vmem:[%s4599_s10 + $0x348] ss:$28 sps:$4 sm:$0xff]  }
  0x38   : > { %1576 = vmatmul.mubr.bf16.gmra.mrb[8].mxu1 %v4150_v49  ;;  %3719 = vmatprep.subr.bf16.mxu0 %v4203_v2  ;;  %v4241_v49 = vld [vmem:[%s4599_s10 + $0x350] ss:$28 sps:$4 sm:$0xff]   ;;  %v4269_v62 = vld [vmem:[%s4599_s10 + $0x168] ss:$28 sps:$4 sm:$0xff]   ;;  %v4277_v2 = vld [vmem:[%s4599_s10 + $0x1d8] ss:$28 sps:$4 sm:$0xff]  }
  0x39   : > { %1583 = vmatprep.mubr.bf16.mxu1 %v4154_v51  ;;  %v4242_v51 = vld [vmem:[%s4599_s10 + $0x10] ss:$28 sps:$4 sm:$0xff]  }
  0x3b   : > { %3720 = vmatpush3.bf16.msra.mxu0 %v4206_v4  ;;  %v4263_v4 = vld [vmem:[%s4599_s10 + $0x12c] ss:$28 sps:$4 sm:$0xff]  }
  0x3c   : > { %3721 = vmatprep.subr.bf16.mxu0 %v4217_v8  ;;  %v4266_v8 = vld [vmem:[%s4599_s10 + $0x164] ss:$28 sps:$4 sm:$0xff]  }
  0x3e   : > { %1423 = vmatmul.mubr.bf16.gmra.mrb[12].mxu0 %v4153_v52  ;;  %v4247_v52 = vld [vmem:[%s4599_s10 + $0x4c] ss:$28 sps:$4 sm:$0xff]  }
  0x3f   : > { %1430 = vmatprep.mubr.bf16.mxu0 %v4157_v53  ;;  %3722 = vmatpush3.bf16.msra.mxu0 %v4220_v10  ;;  %v4246_v53 = vld [vmem:[%s4599_s10 + $0x50] ss:$28 sps:$4 sm:$0xff]   ;;  %v4293_v10 = vld [vmem:[%s4599_s10 + $0x2b8] ss:$28 sps:$4 sm:$0xff]  }
  0x40   : > { %1584 = vmatmul.mubr.bf16.gmra.mrb[12].mxu1 %v4156_v55  ;;  %3723 = vmatprep.subr.bf16.mxu0 %v4231_v13  ;;  %v4249_v55 = vld [vmem:[%s4599_s10 + $0x48] ss:$28 sps:$4 sm:$0xff]   ;;  %v4294_v13 = vld [vmem:[%s4599_s10 + $0x2f0] ss:$28 sps:$4 sm:$0xff]  }
  0x41   : > { %1591 = vmatprep.mubr.bf16.mxu1 %v4161_v57  ;;  %v4254_v57 = vld [vmem:[%s4599_s10 + $0xc0] ss:$28 sps:$4 sm:$0xff]  }
  0x43   : > { %3724 = vmatpush3.bf16.msra.mxu0 %v4234_v16  ;;  %v4274_v16 = vld [vmem:[%s4599_s10 + $0x1d4] ss:$28 sps:$4 sm:$0xff]  }
  0x46   : > { %1431 = vmatmul.mubr.bf16.gmra.mrb[16].mxu0 %v4159_v58  ;;  %v4261_v58 = vld [vmem:[%s4599_s10 + $0xf8] ss:$28 sps:$4 sm:$0xff]  }
  0x47   : > { %1438 = vmatprep.mubr.bf16.mxu0 %v4165_v60  ;;  %v4255_v60 = vld [vmem:[%s4599_s10 + $0xbc] ss:$28 sps:$4 sm:$0xff]  }
  0x48   : > { %1592 = vmatmul.mubr.bf16.gmra.mrb[16].mxu1 %v4164_v61  ;;  %v4262_v61 = vld [vmem:[%s4599_s10 + $0x130] ss:$28 sps:$4 sm:$0xff]  }
  0x49   : > { %1599 = vmatprep.mubr.bf16.mxu1 %v4168_v0  ;;  %v4258_v0 = vld [vmem:[%s4599_s10 + $0xf4] ss:$28 sps:$4 sm:$0xff]  }
  0x4e   : > { %1439 = vmatmul.mubr.bf16.gmra.mrb[20].mxu0 %v4167_v1  ;;  %v4270_v1 = vld [vmem:[%s4599_s10 + $0x1a0] ss:$28 sps:$4 sm:$0xff]  }
  0x4f   : > { %1446 = vmatprep.mubr.bf16.mxu0 %v4171_v3  ;;  %v4260_v3 = vld [vmem:[%s4599_s10 + $0xf0] ss:$28 sps:$4 sm:$0xff]  }
  0x50   : > { %1600 = vmatmul.mubr.bf16.gmra.mrb[20].mxu1 %v4170_v5  ;;  %v4278_v5 = vld [vmem:[%s4599_s10 + $0x210] ss:$28 sps:$4 sm:$0xff]  }
  0x51   : > { %1607 = vmatprep.mubr.bf16.mxu1 %v4175_v6  ;;  %v4285_v6 = vld [vmem:[%s4599_s10 + $0x248] ss:$28 sps:$4 sm:$0xff]  }
  0x56   : > { %1447 = vmatmul.mubr.bf16.gmra.mrb[24].mxu0 %v4173_v7  ;;  %v4265_v7 = vld [vmem:[%s4599_s10 + $0x128] ss:$28 sps:$4 sm:$0xff]  }
  0x57   : > { %1454 = vmatprep.mubr.bf16.mxu0 %v4179_v9  ;;  %v4286_v9 = vld [vmem:[%s4599_s10 + $0x280] ss:$28 sps:$4 sm:$0xff]  }
  0x58   : > { %1608 = vmatmul.mubr.bf16.gmra.mrb[24].mxu1 %v4178_v11  ;;  %v4268_v11 = vld [vmem:[%s4599_s10 + $0x160] ss:$28 sps:$4 sm:$0xff]  }
  0x59   : > { %1615 = vmatprep.mubr.bf16.mxu1 %v4182_v12  ;;  %v4271_v12 = vld [vmem:[%s4599_s10 + $0x19c] ss:$28 sps:$4 sm:$0xff]  }
  0x5e   : > { %1455 = vmatmul.mubr.bf16.gmra.mrb[28].mxu0 %v4181_v14  ;;  %v4301_v14 = vld [vmem:[%s4599_s10 + $0x328] ss:$28 sps:$4 sm:$0xff]  }
  0x5f   : > { %1462 = vmatprep.mubr.bf16.mxu0 %v4185_v15  ;;  %v4273_v15 = vld [vmem:[%s4599_s10 + $0x198] ss:$28 sps:$4 sm:$0xff]  }
  0x60   : > { %1616 = vmatmul.mubr.bf16.gmra.mrb[28].mxu1 %v4184_v17  ;;  %v4302_v17 = vld [vmem:[%s4599_s10 + $0x360] ss:$28 sps:$4 sm:$0xff]  }
  0x61   : > { %1623 = vmatprep.mubr.bf16.mxu1 %v4189_v18  ;;  %v4276_v18 = vld [vmem:[%s4599_s10 + $0x1d0] ss:$28 sps:$4 sm:$0xff]  }
  0x66   : > { %1463 = vmatmul.mubr.bf16.gmra.mrb[32].mxu0 %v4187_v19  ;;  %v4279_v19 = vld [vmem:[%s4599_s10 + $0x20c] ss:$28 sps:$4 sm:$0xff]  }
  0x67   : > { %1470 = vmatprep.mubr.bf16.mxu0 %v4194_v20  ;;  %v4281_v20 = vld [vmem:[%s4599_s10 + $0x208] ss:$28 sps:$4 sm:$0xff]  }
  0x68   : > { %1624 = vmatmul.mubr.bf16.gmra.mrb[32].mxu1 %v4192_v21  ;;  %v4282_v21 = vld [vmem:[%s4599_s10 + $0x244] ss:$28 sps:$4 sm:$0xff]  }
  0x69   : > { %1631 = vmatprep.mubr.bf16.mxu1 %v4197_v22  ;;  %v4306_v22 = vld [vmem:[%s5464_s2] sm:$0xff]  }
  0x6a   : > { %3944 = vmatprep.subr.bf16.mxu1 %v4306_v22 }
  0x6e   : > { %1471 = vmatmul.mubr.bf16.gmra.mrb[36].mxu0 %v4196_v23  ;;  %v4284_v23 = vld [vmem:[%s4599_s10 + $0x240] ss:$28 sps:$4 sm:$0xff]  }
  0x6f   : > { %1478 = vmatprep.mubr.bf16.mxu0 %v4200_v24  ;;  %v4307_v24 = vld [vmem:[%s5464_s2 + $0x8] sm:$0xff]  }
  0x70   : > { %1632 = vmatmul.mubr.bf16.gmra.mrb[36].mxu1 %v4199_v25  ;;  %v4287_v25 = vld [vmem:[%s4599_s10 + $0x27c] ss:$28 sps:$4 sm:$0xff]  }
  0x71   : > { %1639 = vmatprep.mubr.bf16.mxu1 %v4204_v26  ;;  %v4308_v26 = vld [vmem:[%s5464_s2 + $0x10] sm:$0xff]  }
  0x76   : > { %1479 = vmatmul.mubr.bf16.gmra.mrb[40].mxu0 %v4202_v27 }
  0x77   : > { %1486 = vmatprep.mubr.bf16.mxu0 %v4208_v28  ;;  %v4792_v28 = vld [vmem:[%s5466_s4] ss:$0 sm:$0xff] }
  0x78   : > { %1640 = vmatmul.mubr.bf16.gmra.mrb[40].mxu1 %v4207_v29 }
  0x79   : > { %1647 = vmatprep.mubr.bf16.mxu1 %v4211_v30  ;;  %v4289_v30 = vld [vmem:[%s4599_s10 + $0x278] ss:$28 sps:$4 sm:$0xff]  }
  0x7e   : > { %1487 = vmatmul.mubr.bf16.gmra.mrb[44].mxu0 %v4210_v31  ;;  %v4309_v31 = vld [vmem:[%s5464_s2 + $0x18] sm:$0xff]  }
  0x7f   : > { %1494 = vmatprep.mubr.bf16.mxu0 %v4214_v32 }
  0x80   : > { %1648 = vmatmul.mubr.bf16.gmra.mrb[44].mxu1 %v4213_v33 }
  0x81   : > { %1655 = vmatprep.mubr.bf16.mxu1 %v4218_v34  ;;  %v4290_v34 = vld [vmem:[%s4599_s10 + $0x2b4] ss:$28 sps:$4 sm:$0xff]  }
  0x86   : > { %1495 = vmatmul.mubr.bf16.gmra.mrb[48].mxu0 %v4216_v35 }
  0x87   : > { %1502 = vmatprep.mubr.bf16.mxu0 %v4222_v36 }
  0x88   : > { %1656 = vmatmul.mubr.bf16.gmra.mrb[48].mxu1 %v4221_v37 }
  0x89   : > { %1663 = vmatprep.mubr.bf16.mxu1 %v4225_v38 }
  0x8e   : > { %1503 = vmatmul.mubr.bf16.gmra.mrb[52].mxu0 %v4224_v39 }
  0x8f   : > { %1510 = vmatprep.mubr.bf16.mxu0 %v4228_v40 }
  0x90   : > { %1664 = vmatmul.mubr.bf16.gmra.mrb[52].mxu1 %v4227_v41 }
  0x91   : > { %1671 = vmatprep.mubr.bf16.mxu1 %v4232_v42  ;;  %v4310_v42 = vld [vmem:[%s5464_s2 + $0x20] sm:$0xff]  }
  0x96   : > { %1511 = vmatmul.mubr.bf16.gmra.mrb[56].mxu0 %v4230_v43 }
  0x97   : > { %1518 = vmatprep.mubr.bf16.mxu0 %v4236_v44 }
  0x98   : > { %1672 = vmatmul.mubr.bf16.gmra.mrb[56].mxu1 %v4235_v45 }
  0x99   : > { %1679 = vmatprep.mubr.bf16.mxu1 %v4239_v46 }
  0x9e   : > { %1519 = vmatmul.mubr.bf16.gmra.mrb[60].mxu0 %v4238_v47 }
  0x9f   : > { %1720 = vmatprep.mubr.bf16.mxu0 %v4244_v48 }
  0xa0   : > { %1680 = vmatmul.mubr.bf16.gmra.mrb[60].mxu1 %v4241_v49 }
  0xa1   : > { %3912 = vmatprep.mubr.msk.bf16.mxu1 %vm1317_vm0, %v4245_v50  ;;  %v4292_v50 = vld [vmem:[%s4599_s10 + $0x2b0] ss:$28 sps:$4 sm:$0xff]  }
  0xa6   : > { %1721 = vmatmul.mubr.bf16.vlgmr.msra.gmra.mrb[64].mxu0 %v4242_v51  ;;  %v4311_v51 = vld [vmem:[%s5464_s2 + $0x28] sm:$0xff]  }
  0xa7   : > { %1728 = vmatprep.mubr.bf16.mxu0 %v4247_v52 }
  0xa8   : > { %3913 = vmatmul.mubr.msk.bf16.vlgmr.msra.gmra.mrb[64].mxu1 %vm1317_vm0, %v4246_v53 }
  0xa9   : > { %3916 = vmatprep.mubr.msk.bf16.mxu1 %vm1317_vm0, %v4253_v54  ;;  %3945 = vmatpush3.bf16.msra.mxu1 %v4306_v22  ;;  %v4295_v54 = vld [vmem:[%s4599_s10 + $0x2ec] ss:$28 sps:$4 sm:$0xff]  }
  0xaa   : > { %3946 = vmatprep.subr.bf16.mxu1 %v4307_v24 }
  0xad   : > { %3947 = vmatpush3.bf16.msra.mxu1 %v4307_v24 }
  0xae   : > { %1729 = vmatmul.mubr.bf16.gmra.mrb[68].mxu0 %v4249_v55  ;;  %3948 = vmatprep.subr.bf16.mxu1 %v4308_v26 }
  0xaf   : > { %1736 = vmatprep.mubr.bf16.mxu0 %v4250_v56 }
  0xb0   : > { %3917 = vmatmul.mubr.msk.bf16.gmra.mrb[68].mxu1 %vm1317_vm0, %v4254_v57 }
  0xb1   : > { %3920 = vmatprep.mubr.msk.bf16.mxu1 %vm1317_vm0, %v4261_v58  ;;  %3949 = vmatpush3.bf16.msra.mxu1 %v4308_v26 }
  0xb2   : > { %3950 = vmatprep.subr.bf16.mxu1 %v4309_v31 }
  0xb5   : > { %3951 = vmatpush3.bf16.msra.mxu1 %v4309_v31 }
  0xb6   : > { %1737 = vmatmul.mubr.bf16.gmra.mrb[72].mxu0 %v4252_v59  ;;  %3952 = vmatprep.subr.bf16.mxu1 %v4310_v42 }
  0xb7   : > { %1744 = vmatprep.mubr.bf16.mxu0 %v4255_v60 }
  0xb8   : > { %3921 = vmatmul.mubr.msk.bf16.gmra.mrb[72].mxu1 %vm1317_vm0, %v4262_v61 }
  0xb9   : > { %3924 = vmatprep.mubr.msk.bf16.mxu1 %vm1317_vm0, %v4269_v62  ;;  %3953 = vmatpush3.bf16.msra.mxu1 %v4310_v42  ;;  %v4312_v62 = vld [vmem:[%s5464_s2 + $0x30] sm:$0xff]  }
  0xba   : > { %3954 = vmatprep.subr.bf16.mxu1 %v4311_v51 }
  0xbd   : > { %3955 = vmatpush3.bf16.msra.mxu1 %v4311_v51 }
  0xbe   : > { %1745 = vmatmul.mubr.bf16.gmra.mrb[76].mxu0 %v4257_v63  ;;  %3956 = vmatprep.subr.bf16.mxu1 %v4312_v62 }
  0xbf   : > { %1752 = vmatprep.mubr.bf16.mxu0 %v4258_v0 }
  0xc0   : > { %3925 = vmatmul.mubr.msk.bf16.gmra.mrb[76].mxu1 %vm1317_vm0, %v4270_v1 }
  0xc1   : > { %3928 = vmatprep.mubr.msk.bf16.mxu1 %vm1317_vm0, %v4277_v2  ;;  %3957 = vmatpush3.bf16.msra.mxu1 %v4312_v62 }
  0xc6   : > { %1753 = vmatmul.mubr.bf16.gmra.mrb[80].mxu0 %v4260_v3 }
  0xc7   : > { %1760 = vmatprep.mubr.bf16.mxu0 %v4263_v4 }
  0xc8   : > { %3929 = vmatmul.mubr.msk.bf16.gmra.mrb[80].mxu1 %vm1317_vm0, %v4278_v5 }
  0xc9   : > { %3932 = vmatprep.mubr.msk.bf16.mxu1 %vm1317_vm0, %v4285_v6  ;;  %v4297_v6 = vld [vmem:[%s4599_s10 + $0x2e8] ss:$28 sps:$4 sm:$0xff]  }
  0xce   : > { %1761 = vmatmul.mubr.bf16.gmra.mrb[84].mxu0 %v4265_v7  ;;  %v4313_v7 = vld [vmem:[%s5464_s2 + $0x38] sm:$0xff]  }
  0xcf   : > { %1768 = vmatprep.mubr.bf16.mxu0 %v4266_v8  ;;  %3958 = vmatprep.subr.bf16.mxu1 %v4313_v7 }
  0xd0   : > { %3933 = vmatmul.mubr.msk.bf16.gmra.mrb[84].mxu1 %vm1317_vm0, %v4286_v9 }
  0xd1   : > { %3936 = vmatprep.mubr.msk.bf16.mxu1 %vm1317_vm0, %v4293_v10  ;;  %v4298_v10 = vld [vmem:[%s4599_s10 + $0x324] ss:$28 sps:$4 sm:$0xff]   ;;  %3959 = vmatpush3.bf16.msra.mxu1 %v4313_v7 }
  0xd6   : > { %1769 = vmatmul.mubr.bf16.gmra.mrb[88].mxu0 %v4268_v11 }
  0xd7   : > { %1776 = vmatprep.mubr.bf16.mxu0 %v4271_v12 }
  0xd8   : > { %3937 = vmatmul.mubr.msk.bf16.gmra.mrb[88].mxu1 %vm1317_vm0, %v4294_v13 }
  0xd9   : > { %3940 = vmatprep.mubr.msk.bf16.mxu1 %vm1317_vm0, %v4301_v14 }
  0xde   : > { %1777 = vmatmul.mubr.bf16.gmra.mrb[92].mxu0 %v4273_v15 }
  0xdf   : > { %1784 = vmatprep.mubr.bf16.mxu0 %v4274_v16 }
  0xe0   : > { %3941 = vmatmul.mubr.msk.bf16.gmra.mrb[92].mxu1 %vm1317_vm0, %v4302_v17 }
  0xe6   : > { %1785 = vmatmul.mubr.bf16.gmra.mrb[96].mxu0 %v4276_v18 }
  0xe7   : > { %1792 = vmatprep.mubr.bf16.mxu0 %v4279_v19 }
  0xee   : > { %1793 = vmatmul.mubr.bf16.gmra.mrb[100].mxu0 %v4281_v20 }
  0xef   : > { %1800 = vmatprep.mubr.bf16.mxu0 %v4282_v21 }
  0xf6   : > { %1801 = vmatmul.mubr.bf16.gmra.mrb[104].mxu0 %v4284_v23 }
  0xf7   : > { %1808 = vmatprep.mubr.bf16.mxu0 %v4287_v25  ;;  %v4300_v25 = vld [vmem:[%s4599_s10 + $0x320] ss:$28 sps:$4 sm:$0xff]  }
  0xf9   : > { %v3501_v27 = vpop.f32.mrb[0].mxu0 }
  0xfa   : > { %v3502_v29 = vpop.f32.mrb[1].mxu0 }
  0xfb   : > { %v3503_v32 = vadd.f32 %v3502_v29, %v3501_v27  ;;  %v3504_v33 = vpop.f32.mrb[2].mxu0  ;;  %v3613_v35 = vpop.f32.mrb[0].mxu1  ;;  %v4303_v29 = vld [vmem:[%s4599_s10 + $0x35c] ss:$28 sps:$4 sm:$0xff]  }
  0xfc   : > { %v3505_v36 = vpop.f32.mrb[3].mxu0  ;;  %v3614_v39 = vpop.f32.mrb[1].mxu1 }
  0xfd   : > { %v1401_v37 = vadd.f32 %v3503_v32, %v4792_v28  ;;  %v3506_v38 = vadd.f32 %v3505_v36, %v3504_v33  ;;  %v3615_v40 = vadd.f32 %v3614_v39, %v3613_v35  ;;  %v3616_v41 = vpop.f32.mrb[2].mxu1 }
  0xfe   : > { %1809 = vmatmul.mubr.bf16.gmra.mrb[108].mxu0 %v4289_v30  ;;  %v3617_v44 = vpop.f32.mrb[3].mxu1 }
  0xff   : > { %v1404_v43 = vadd.f32 %v3506_v38, %v4792_v28  ;;  %1816 = vmatprep.mubr.bf16.mxu0 %v4290_v34  ;;  %v4804_v45 = vadd.f32 %v3615_v40, %v1401_v37  ;;  %v3618_v46 = vadd.f32 %v3617_v44, %v3616_v41  ;;  %v4305_v44 = vld [vmem:[%s4599_s10 + $0x358] ss:$28 sps:$4 sm:$0xff]  }
 0x101   : > { %v3507_v47 = vpop.f32.mrb[4].mxu0  ;;  %v4806_v48 = vadd.f32 %v3618_v46, %v1404_v43 }
 0x102   : > { %v3508_v49 = vpop.f32.mrb[5].mxu0 }
 0x103   : > { %v3509_v52 = vadd.f32 %v3508_v49, %v3507_v47  ;;  %v3510_v53 = vpop.f32.mrb[6].mxu0  ;;  %v3619_v55 = vpop.f32.mrb[4].mxu1 }
 0x104   : > { %v3511_v56 = vpop.f32.mrb[7].mxu0  ;;  %v3620_v59 = vpop.f32.mrb[5].mxu1 }
 0x105   : > { %v1409_v57 = vadd.f32 %v3509_v52, %v4792_v28  ;;  %v3512_v58 = vadd.f32 %v3511_v56, %v3510_v53  ;;  %v3621_v60 = vadd.f32 %v3620_v59, %v3619_v55  ;;  %v3622_v61 = vpop.f32.mrb[6].mxu1 }
 0x106   : > { %1817 = vmatmul.mubr.bf16.gmra.mrb[112].mxu0 %v4292_v50  ;;  %v3623_v0 = vpop.f32.mrb[7].mxu1 }
 0x107   : > { %v1412_v63 = vadd.f32 %v3512_v58, %v4792_v28  ;;  %1824 = vmatprep.mubr.bf16.mxu0 %v4295_v54  ;;  %v4818_v1 = vadd.f32 %v3621_v60, %v1409_v57  ;;  %v3624_v2 = vadd.f32 %v3623_v0, %v3622_v61 }
 0x109   : > { %v3513_v3 = vpop.f32.mrb[8].mxu0  ;;  %v4820_v4 = vadd.f32 %v3624_v2, %v1412_v63 }
 0x10a   : > { %v3514_v5 = vpop.f32.mrb[9].mxu0 }
 0x10b   : > { %v3515_v8 = vadd.f32 %v3514_v5, %v3513_v3  ;;  %v3516_v9 = vpop.f32.mrb[10].mxu0  ;;  %v3625_v11 = vpop.f32.mrb[8].mxu1 }
 0x10c   : > { %v3517_v12 = vpop.f32.mrb[11].mxu0  ;;  %v3626_v15 = vpop.f32.mrb[9].mxu1 }
 0x10d   : > { %v1417_v13 = vadd.f32 %v3515_v8, %v4792_v28  ;;  %v3518_v14 = vadd.f32 %v3517_v12, %v3516_v9  ;;  %v3627_v16 = vadd.f32 %v3626_v15, %v3625_v11  ;;  %v3628_v17 = vpop.f32.mrb[10].mxu1 }
 0x10e   : > { %1825 = vmatmul.mubr.bf16.gmra.mrb[116].mxu0 %v4297_v6  ;;  %v3629_v19 = vpop.f32.mrb[11].mxu1 }
 0x10f   : > { %v1420_v18 = vadd.f32 %v3518_v14, %v4792_v28  ;;  %1832 = vmatprep.mubr.bf16.mxu0 %v4298_v10  ;;  %v4829_v20 = vadd.f32 %v3627_v16, %v1417_v13  ;;  %v3630_v21 = vadd.f32 %v3629_v19, %v3628_v17 }
 0x111   : > { %v3519_v22 = vpop.f32.mrb[12].mxu0  ;;  %v4831_v23 = vadd.f32 %v3630_v21, %v1420_v18 }
 0x112   : > { %v3520_v24 = vpop.f32.mrb[13].mxu0 }
 0x113   : > { %v3521_v26 = vadd.f32 %v3520_v24, %v3519_v22  ;;  %v3522_v27 = vpop.f32.mrb[14].mxu0  ;;  %v3631_v30 = vpop.f32.mrb[12].mxu1 }
 0x114   : > { %v3523_v31 = vpop.f32.mrb[15].mxu0  ;;  %v3632_v34 = vpop.f32.mrb[13].mxu1 }
 0x115   : > { %v1425_v32 = vadd.f32 %v3521_v26, %v4792_v28  ;;  %v3524_v33 = vadd.f32 %v3523_v31, %v3522_v27  ;;  %v3633_v35 = vadd.f32 %v3632_v34, %v3631_v30  ;;  %v3634_v36 = vpop.f32.mrb[14].mxu1 }
 0x116   : > { %1833 = vmatmul.mubr.bf16.gmra.mrb[120].mxu0 %v4300_v25  ;;  %v3635_v38 = vpop.f32.mrb[15].mxu1 }
 0x117   : > { %v1428_v37 = vadd.f32 %v3524_v33, %v4792_v28  ;;  %1840 = vmatprep.mubr.bf16.mxu0 %v4303_v29  ;;  %v4837_v39 = vadd.f32 %v3633_v35, %v1425_v32  ;;  %v3636_v40 = vadd.f32 %v3635_v38, %v3634_v36 }
 0x119   : > { %v3525_v41 = vpop.f32.mrb[16].mxu0  ;;  %v4839_v42 = vadd.f32 %v3636_v40, %v1428_v37 }
 0x11a   : > { %v3526_v43 = vpop.f32.mrb[17].mxu0 }
 0x11b   : > { %v3527_v46 = vadd.f32 %v3526_v43, %v3525_v41  ;;  %v3528_v47 = vpop.f32.mrb[18].mxu0  ;;  %v3637_v49 = vpop.f32.mrb[16].mxu1 }
 0x11c   : > { %v3529_v50 = vpop.f32.mrb[19].mxu0  ;;  %v3638_v53 = vpop.f32.mrb[17].mxu1 }
 0x11d   : > { %v1433_v51 = vadd.f32 %v3527_v46, %v4792_v28  ;;  %v3530_v52 = vadd.f32 %v3529_v50, %v3528_v47  ;;  %v3639_v54 = vadd.f32 %v3638_v53, %v3637_v49  ;;  %v3640_v55 = vpop.f32.mrb[18].mxu1 }
 0x11e   : > { %1841 = vmatmul.mubr.bf16.gmra.mrb[124].mxu0 %v4305_v44  ;;  %v3641_v57 = vpop.f32.mrb[19].mxu1 }
 0x11f   : > { %v1436_v56 = vadd.f32 %v3530_v52, %v4792_v28  ;;  %v4844_v58 = vadd.f32 %v3639_v54, %v1433_v51  ;;  %v3642_v59 = vadd.f32 %v3641_v57, %v3640_v55 }
 0x121   : > { %v3531_v60 = vpop.f32.mrb[20].mxu0  ;;  %v4846_v61 = vadd.f32 %v3642_v59, %v1436_v56 }
 0x122   : > { %v3532_v62 = vpop.f32.mrb[21].mxu0 }
 0x123   : > { %v3533_v63 = vadd.f32 %v3532_v62, %v3531_v60  ;;  %v3534_v0 = vpop.f32.mrb[22].mxu0  ;;  %v3643_v2 = vpop.f32.mrb[20].mxu1 }
 0x124   : > { %v3535_v3 = vpop.f32.mrb[23].mxu0  ;;  %v3644_v7 = vpop.f32.mrb[21].mxu1 }
 0x125   : > { %v1441_v5 = vadd.f32 %v3533_v63, %v4792_v28  ;;  %v3536_v6 = vadd.f32 %v3535_v3, %v3534_v0  ;;  %v3645_v8 = vadd.f32 %v3644_v7, %v3643_v2  ;;  %v3646_v9 = vpop.f32.mrb[22].mxu1 }
 0x126   : > { %v3647_v11 = vpop.f32.mrb[23].mxu1 }
 0x127   : > { %v1444_v10 = vadd.f32 %v3536_v6, %v4792_v28  ;;  %v4850_v12 = vadd.f32 %v3645_v8, %v1441_v5  ;;  %v3648_v13 = vadd.f32 %v3647_v11, %v3646_v9 }
 0x129   : > { %v3537_v14 = vpop.f32.mrb[24].mxu0  ;;  %v4852_v15 = vadd.f32 %v3648_v13, %v1444_v10 }
 0x12a   : > { %v3538_v16 = vpop.f32.mrb[25].mxu0 }
 0x12b   : > { %v3539_v17 = vadd.f32 %v3538_v16, %v3537_v14  ;;  %v3540_v18 = vpop.f32.mrb[26].mxu0  ;;  %v3649_v19 = vpop.f32.mrb[24].mxu1 }
 0x12c   : > { %v3541_v21 = vpop.f32.mrb[27].mxu0  ;;  %v3650_v25 = vpop.f32.mrb[25].mxu1 }
 0x12d   : > { %v1449_v22 = vadd.f32 %v3539_v17, %v4792_v28  ;;  %v3542_v24 = vadd.f32 %v3541_v21, %v3540_v18  ;;  %v3651_v26 = vadd.f32 %v3650_v25, %v3649_v19  ;;  %v3652_v27 = vpop.f32.mrb[26].mxu1 }
 0x12e   : > { %v3653_v30 = vpop.f32.mrb[27].mxu1 }
 0x12f   : > { %v1452_v29 = vadd.f32 %v3542_v24, %v4792_v28  ;;  %v4856_v31 = vadd.f32 %v3651_v26, %v1449_v22  ;;  %v3654_v32 = vadd.f32 %v3653_v30, %v3652_v27 }
 0x131   : > { %v3543_v33 = vpop.f32.mrb[28].mxu0  ;;  %v4858_v34 = vadd.f32 %v3654_v32, %v1452_v29 }
 0x132   : > { %v3544_v35 = vpop.f32.mrb[29].mxu0 }
 0x133   : > { %v3545_v36 = vadd.f32 %v3544_v35, %v3543_v33  ;;  %v3546_v37 = vpop.f32.mrb[30].mxu0  ;;  %v3655_v38 = vpop.f32.mrb[28].mxu1 }
 0x134   : > { %v3547_v40 = vpop.f32.mrb[31].mxu0  ;;  %v3656_v44 = vpop.f32.mrb[29].mxu1 }
 0x135   : > { %v1457_v41 = vadd.f32 %v3545_v36, %v4792_v28  ;;  %v3548_v43 = vadd.f32 %v3547_v40, %v3546_v37  ;;  %v3657_v46 = vadd.f32 %v3656_v44, %v3655_v38  ;;  %v3658_v47 = vpop.f32.mrb[30].mxu1 }
 0x136   : > { %v3659_v50 = vpop.f32.mrb[31].mxu1 }
 0x137   : > { %v1460_v49 = vadd.f32 %v3548_v43, %v4792_v28  ;;  %v4862_v51 = vadd.f32 %v3657_v46, %v1457_v41  ;;  %v3660_v52 = vadd.f32 %v3659_v50, %v3658_v47 }
 0x139   : > { %v3549_v53 = vpop.f32.mrb[32].mxu0  ;;  %v4864_v54 = vadd.f32 %v3660_v52, %v1460_v49 }
 0x13a   : > { %v3550_v55 = vpop.f32.mrb[33].mxu0 }
 0x13b   : > { %v3551_v56 = vadd.f32 %v3550_v55, %v3549_v53  ;;  %v3552_v57 = vpop.f32.mrb[34].mxu0  ;;  %v3661_v59 = vpop.f32.mrb[32].mxu1 }
 0x13c   : > { %v3553_v60 = vpop.f32.mrb[35].mxu0  ;;  %v3662_v0 = vpop.f32.mrb[33].mxu1 }
 0x13d   : > { %v1465_v62 = vadd.f32 %v3551_v56, %v4792_v28  ;;  %v3554_v63 = vadd.f32 %v3553_v60, %v3552_v57  ;;  %v3663_v2 = vadd.f32 %v3662_v0, %v3661_v59  ;;  %v3664_v3 = vpop.f32.mrb[34].mxu1 }
 0x13e   : > { %v3665_v6 = vpop.f32.mrb[35].mxu1 }
 0x13f   : > { %v1468_v5 = vadd.f32 %v3554_v63, %v4792_v28  ;;  %v4868_v7 = vadd.f32 %v3663_v2, %v1465_v62  ;;  %v3666_v8 = vadd.f32 %v3665_v6, %v3664_v3 }
 0x141   : > { %v3555_v9 = vpop.f32.mrb[36].mxu0  ;;  %v4870_v10 = vadd.f32 %v3666_v8, %v1468_v5 }
 0x142   : > { %v3556_v11 = vpop.f32.mrb[37].mxu0 }
 0x143   : > { %v3557_v13 = vadd.f32 %v3556_v11, %v3555_v9  ;;  %v3558_v14 = vpop.f32.mrb[38].mxu0  ;;  %v3667_v16 = vpop.f32.mrb[36].mxu1 }
 0x144   : > { %v3559_v17 = vpop.f32.mrb[39].mxu0  ;;  %v3668_v21 = vpop.f32.mrb[37].mxu1 }
 0x145   : > { %v1473_v18 = vadd.f32 %v3557_v13, %v4792_v28  ;;  %v3560_v19 = vadd.f32 %v3559_v17, %v3558_v14  ;;  %v3669_v22 = vadd.f32 %v3668_v21, %v3667_v16  ;;  %v3670_v24 = vpop.f32.mrb[38].mxu1 }
 0x146   : > { %v3671_v26 = vpop.f32.mrb[39].mxu1 }
 0x147   : > { %v1476_v25 = vadd.f32 %v3560_v19, %v4792_v28  ;;  %v4874_v27 = vadd.f32 %v3669_v22, %v1473_v18  ;;  %v3672_v29 = vadd.f32 %v3671_v26, %v3670_v24 }
 0x149   : > { %v3561_v30 = vpop.f32.mrb[40].mxu0  ;;  %v4876_v32 = vadd.f32 %v3672_v29, %v1476_v25 }
 0x14a   : > { %v3562_v33 = vpop.f32.mrb[41].mxu0 }
 0x14b   : > { %v3563_v35 = vadd.f32 %v3562_v33, %v3561_v30  ;;  %v3564_v36 = vpop.f32.mrb[42].mxu0  ;;  %v3673_v37 = vpop.f32.mrb[40].mxu1 }
 0x14c   : > { %v3565_v38 = vpop.f32.mrb[43].mxu0  ;;  %v3674_v43 = vpop.f32.mrb[41].mxu1 }
 0x14d   : > { %v1481_v40 = vadd.f32 %v3563_v35, %v4792_v28  ;;  %v3566_v41 = vadd.f32 %v3565_v38, %v3564_v36  ;;  %v3675_v44 = vadd.f32 %v3674_v43, %v3673_v37  ;;  %v3676_v46 = vpop.f32.mrb[42].mxu1 }
 0x14e   : > { %v3677_v49 = vpop.f32.mrb[43].mxu1 }
 0x14f   : > { %v1484_v47 = vadd.f32 %v3566_v41, %v4792_v28  ;;  %v4880_v50 = vadd.f32 %v3675_v44, %v1481_v40  ;;  %v3678_v52 = vadd.f32 %v3677_v49, %v3676_v46 }
 0x151   : > { %v3567_v53 = vpop.f32.mrb[44].mxu0  ;;  %v4882_v55 = vadd.f32 %v3678_v52, %v1484_v47 }
 0x152   : > { %v3568_v56 = vpop.f32.mrb[45].mxu0 }
 0x153   : > { %v3569_v57 = vadd.f32 %v3568_v56, %v3567_v53  ;;  %v3570_v59 = vpop.f32.mrb[46].mxu0  ;;  %v3679_v60 = vpop.f32.mrb[44].mxu1 }
 0x154   : > { %v3571_v62 = vpop.f32.mrb[47].mxu0  ;;  %v3680_v2 = vpop.f32.mrb[45].mxu1 }
 0x155   : > { %v1489_v63 = vadd.f32 %v3569_v57, %v4792_v28  ;;  %v3572_v0 = vadd.f32 %v3571_v62, %v3570_v59  ;;  %v3681_v3 = vadd.f32 %v3680_v2, %v3679_v60  ;;  %v3682_v5 = vpop.f32.mrb[46].mxu1 }
 0x156   : > { %v3683_v8 = vpop.f32.mrb[47].mxu1 }
 0x157   : > { %v1492_v6 = vadd.f32 %v3572_v0, %v4792_v28  ;;  %v4886_v9 = vadd.f32 %v3681_v3, %v1489_v63  ;;  %v3684_v11 = vadd.f32 %v3683_v8, %v3682_v5 }
 0x159   : > { %v3573_v13 = vpop.f32.mrb[48].mxu0  ;;  %v4888_v14 = vadd.f32 %v3684_v11, %v1492_v6 }
 0x15a   : > { %v3574_v16 = vpop.f32.mrb[49].mxu0 }
 0x15b   : > { %v3575_v17 = vadd.f32 %v3574_v16, %v3573_v13  ;;  %v3576_v18 = vpop.f32.mrb[50].mxu0  ;;  %v3685_v19 = vpop.f32.mrb[48].mxu1 }
 0x15c   : > { %v3577_v21 = vpop.f32.mrb[51].mxu0  ;;  %v3686_v25 = vpop.f32.mrb[49].mxu1 }
 0x15d   : > { %v1497_v22 = vadd.f32 %v3575_v17, %v4792_v28  ;;  %v3578_v24 = vadd.f32 %v3577_v21, %v3576_v18  ;;  %v3687_v26 = vadd.f32 %v3686_v25, %v3685_v19  ;;  %v3688_v29 = vpop.f32.mrb[50].mxu1 }
 0x15e   : > { %v3689_v33 = vpop.f32.mrb[51].mxu1 }
 0x15f   : > { %v1500_v30 = vadd.f32 %v3578_v24, %v4792_v28  ;;  %v4892_v35 = vadd.f32 %v3687_v26, %v1497_v22  ;;  %v3690_v36 = vadd.f32 %v3689_v33, %v3688_v29 }
 0x161   : > { %v3579_v37 = vpop.f32.mrb[52].mxu0  ;;  %v4894_v38 = vadd.f32 %v3690_v36, %v1500_v30 }
 0x162   : > { %v3580_v40 = vpop.f32.mrb[53].mxu0 }
 0x163   : > { %v3581_v41 = vadd.f32 %v3580_v40, %v3579_v37  ;;  %v3582_v43 = vpop.f32.mrb[54].mxu0  ;;  %v3691_v44 = vpop.f32.mrb[52].mxu1 }
 0x164   : > { %v3583_v46 = vpop.f32.mrb[55].mxu0  ;;  %v3692_v52 = vpop.f32.mrb[53].mxu1 }
 0x165   : > { %v1505_v47 = vadd.f32 %v3581_v41, %v4792_v28  ;;  %v3584_v49 = vadd.f32 %v3583_v46, %v3582_v43  ;;  %v3693_v53 = vadd.f32 %v3692_v52, %v3691_v44  ;;  %v3694_v56 = vpop.f32.mrb[54].mxu1 }
 0x166   : > { %v3695_v59 = vpop.f32.mrb[55].mxu1 }
 0x167   : > { %v1508_v57 = vadd.f32 %v3584_v49, %v4792_v28  ;;  %v4898_v60 = vadd.f32 %v3693_v53, %v1505_v47  ;;  %v3696_v62 = vadd.f32 %v3695_v59, %v3694_v56 }
 0x169   : > { %v3585_v63 = vpop.f32.mrb[56].mxu0  ;;  %v4900_v0 = vadd.f32 %v3696_v62, %v1508_v57 }
 0x16a   : > { %v3586_v2 = vpop.f32.mrb[57].mxu0 }
 0x16b   : > { %v3587_v3 = vadd.f32 %v3586_v2, %v3585_v63  ;;  %v3588_v5 = vpop.f32.mrb[58].mxu0  ;;  %v3697_v6 = vpop.f32.mrb[56].mxu1 }
 0x16c   : > { %v3589_v8 = vpop.f32.mrb[59].mxu0  ;;  %v3698_v16 = vpop.f32.mrb[57].mxu1 }
 0x16d   : > { %v1513_v11 = vadd.f32 %v3587_v3, %v4792_v28  ;;  %v3590_v13 = vadd.f32 %v3589_v8, %v3588_v5  ;;  %v3699_v17 = vadd.f32 %v3698_v16, %v3697_v6  ;;  %v3700_v18 = vpop.f32.mrb[58].mxu1 }
 0x16e   : > { %v3701_v21 = vpop.f32.mrb[59].mxu1 }
 0x16f   : > { %v1516_v19 = vadd.f32 %v3590_v13, %v4792_v28  ;;  %v4904_v22 = vadd.f32 %v3699_v17, %v1513_v11  ;;  %v3702_v24 = vadd.f32 %v3701_v21, %v3700_v18  ;;  %v4314_v17 = vld [vmem:[%s5464_s2 + $0x40] sm:$0xff]   ;;  %v4315_v18 = vld [vmem:[%s5464_s2 + $0x48] sm:$0xff]  }
 0x170   : > { %3992 = vmatprep.subr.bf16.mxu0 %v4314_v17 }
 0x171   : > { %v3591_v25 = vpop.f32.mrb[60].mxu0  ;;  %v4906_v26 = vadd.f32 %v3702_v24, %v1516_v19  ;;  %3993 = vmatpush3.bf16.msra.mxu0 %v4314_v17 }
 0x172   : > { %v3592_v29 = vpop.f32.mrb[61].mxu0  ;;  %3994 = vmatprep.subr.bf16.mxu0 %v4315_v18 }
 0x173   : > { %v3593_v30 = vadd.f32 %v3592_v29, %v3591_v25  ;;  %v3594_v33 = vpop.f32.mrb[62].mxu0  ;;  %v3703_v36 = vpop.f32.mrb[60].mxu1 }
 0x174   : > { %v3595_v37 = vpop.f32.mrb[63].mxu0  ;;  %v3704_v43 = vpop.f32.mrb[61].mxu1 }
 0x175   : > { %v1521_v40 = vadd.f32 %v3593_v30, %v4792_v28  ;;  %v3596_v41 = vadd.f32 %v3595_v37, %v3594_v33  ;;  %v3705_v44 = vadd.f32 %v3704_v43, %v3703_v36  ;;  %v3706_v46 = vpop.f32.mrb[62].mxu1  ;;  %3995 = vmatpush3.bf16.msra.mxu0 %v4315_v18 }
 0x176   : > { %v3707_v49 = vpop.f32.mrb[63].mxu1 }
 0x177   : > { %v1524_v47 = vadd.f32 %v3596_v41, %v4792_v28  ;;  %v4910_v52 = vadd.f32 %v3705_v44, %v1521_v40  ;;  %v3708_v53 = vadd.f32 %v3707_v49, %v3706_v46 }
 0x179   : > { %v3725_v56 = vpop.f32.mrb[64].mxu0  ;;  %v4912_v57 = vadd.f32 %v3708_v53, %v1524_v47  ;;  %v4317_v53 = vld [vmem:[%s5464_s2 + $0x58] sm:$0xff]  }
 0x17a   : > { %v3726_v59 = vpop.f32.mrb[65].mxu0 }
 0x17b   : > { %v3727_v62 = vadd.f32 %v3726_v59, %v3725_v56  ;;  %v3728_v63 = vpop.f32.mrb[66].mxu0  ;;  %v3914_v3 = vpop.f32.mrb[64].mxu1 }
 0x17c   : > { %v3729_v2 = vpop.f32.mrb[67].mxu0  ;;  %v1883_v8 = vpop.f32.mrb[65].mxu1 }
 0x17d   : > { %v3730_v5 = vadd.f32 %v3729_v2, %v3728_v63  ;;  %v1723_v6 = vadd.f32 %v3727_v62, %v4804_v45  ;;  %v3915_v11 = vpop.f32.mrb[66].mxu1 }
 0x17e   : > { %v1886_v16 = vpop.f32.mrb[67].mxu1 }
 0x17f   : > { %v1884_v13 = vadd.f32 %v1883_v8, %v1723_v6  ;;  %v1726_v28 = vadd.f32 %v3730_v5, %v4806_v48  ;;  %v4316_v48 = vld [vmem:[%s5464_s2 + $0x50] sm:$0xff]  }
 0x180   : > { %3996 = vmatprep.subr.bf16.mxu0 %v4316_v48 }
 0x181   : > { %v1887_v19 = vadd.f32 %v1886_v16, %v1726_v28  ;;  %v3731_v21 = vpop.f32.mrb[68].mxu0  ;;  %v2010_v45 = vmax.f32 %v1884_v13, 0.0  ;;  %3997 = vmatpush3.bf16.msra.mxu0 %v4316_v48 }
 0x182   : > { %v3732_v24 = vpop.f32.mrb[69].mxu0  ;;  %3998 = vmatprep.subr.bf16.mxu0 %v4317_v53 }
 0x183   : > { %v2011_v25 = vmax.f32 %v1887_v19, 0.0  ;;  %v3733_v29 = vadd.f32 %v3732_v24, %v3731_v21  ;;  %v3734_v30 = vpop.f32.mrb[70].mxu0  ;;  %v3918_v36 = vpop.f32.mrb[68].mxu1  ;;  %v4319_v21 = vld [vmem:[%s5464_s2 + $0x68] sm:$0xff]  }
 0x184   : > { %v3735_v33 = vpop.f32.mrb[71].mxu0  ;;  %v1899_v43 = vpop.f32.mrb[69].mxu1 }
 0x185   : > { %v2042_v37 = vpack.c.bf16 %v2011_v25, %v2010_v45  ;;  %v1731_v40 = vadd.f32 %v3733_v29, %v4818_v1  ;;  %v3736_v41 = vadd.f32 %v3735_v33, %v3734_v30  ;;  %v3919_v44 = vpop.f32.mrb[70].mxu1  ;;  %3999 = vmatpush3.bf16.msra.mxu0 %v4317_v53 }
 0x186   : > { %v1902_v49 = vpop.f32.mrb[71].mxu1 }
 0x187   : > { %v1892_v46 = vadd.f32 %v3914_v3, %v1731_v40  ;;  %v1734_v47 = vadd.f32 %v3736_v41, %v4820_v4  ;;  %3960 = vmatprep.mubr.bf16.mxu1 %v2042_v37  ;;  %v4318_v4 = vld [vmem:[%s5464_s2 + $0x60] sm:$0xff]  }
 0x188   : > { %4000 = vmatprep.subr.bf16.mxu0 %v4318_v4 }
 0x189   : > { %v1895_v56 = vadd.f32 %v3915_v11, %v1734_v47  ;;  %v3737_v59 = vpop.f32.mrb[72].mxu0  ;;  %v2012_v63 = vmax.f32 %v1892_v46, 0.0  ;;  %4001 = vmatpush3.bf16.msra.mxu0 %v4318_v4 }
 0x18a   : > { %v3738_v62 = vpop.f32.mrb[73].mxu0  ;;  %4002 = vmatprep.subr.bf16.mxu0 %v4319_v21 }
 0x18b   : > { %v2013_v1 = vmax.f32 %v1895_v56, 0.0  ;;  %v3739_v2 = vadd.f32 %v3738_v62, %v3737_v59  ;;  %v3740_v5 = vpop.f32.mrb[74].mxu0  ;;  %v4933_v6 = vpop.f32.mrb[72].mxu1 }
 0x18c   : > { %v3741_v3 = vpop.f32.mrb[75].mxu0  ;;  %v1915_v11 = vpop.f32.mrb[73].mxu1 }
 0x18d   : > { %v2043_v8 = vpack.c.bf16 %v2013_v1, %v2012_v63  ;;  %v3742_v13 = vadd.f32 %v3741_v3, %v3740_v5  ;;  %v1739_v28 = vadd.f32 %v3739_v2, %v4829_v20  ;;  %v4936_v16 = vpop.f32.mrb[74].mxu1  ;;  %4003 = vmatpush3.bf16.msra.mxu0 %v4319_v21 }
 0x18e   : > { %v1918_v19 = vpop.f32.mrb[75].mxu1 }
 0x18f   : > { %v1900_v17 = vadd.f32 %v1899_v43, %v1739_v28  ;;  %3961 = vmatmul.mubr.bf16.vlgmr.msra.gmra.mrb[96].mxu1 %v2043_v8  ;;  %v1742_v18 = vadd.f32 %v3742_v13, %v4831_v23 }
 0x191   : > { %v1903_v24 = vadd.f32 %v1902_v49, %v1742_v18  ;;  %v3743_v45 = vpop.f32.mrb[76].mxu0  ;;  %v2014_v29 = vmax.f32 %v1900_v17, 0.0 }
 0x192   : > { %v3744_v25 = vpop.f32.mrb[77].mxu0 }
 0x193   : > { %v2015_v20 = vmax.f32 %v1903_v24, 0.0  ;;  %v3745_v30 = vadd.f32 %v3744_v25, %v3743_v45  ;;  %v3746_v48 = vpop.f32.mrb[78].mxu0  ;;  %v4942_v37 = vpop.f32.mrb[76].mxu1 }
 0x194   : > { %v3747_v33 = vpop.f32.mrb[79].mxu0  ;;  %v1931_v43 = vpop.f32.mrb[77].mxu1 }
 0x195   : > { %v2044_v40 = vpack.c.bf16 %v2015_v20, %v2014_v29  ;;  %v1747_v23 = vadd.f32 %v3745_v30, %v4837_v39  ;;  %v3748_v41 = vadd.f32 %v3747_v33, %v3746_v48  ;;  %v4945_v46 = vpop.f32.mrb[78].mxu1 }
 0x196   : > { %v1934_v53 = vpop.f32.mrb[79].mxu1 }
 0x197   : > { %v1908_v47 = vadd.f32 %v3918_v36, %v1747_v23  ;;  %v1750_v49 = vadd.f32 %v3748_v41, %v4839_v42  ;;  %3964 = vmatprep.mubr.bf16.mxu1 %v2044_v40 }
 0x199   : > { %v1911_v56 = vadd.f32 %v3919_v44, %v1750_v49  ;;  %v3749_v59 = vpop.f32.mrb[80].mxu0  ;;  %v2016_v63 = vmax.f32 %v1908_v47, 0.0 }
 0x19a   : > { %v3750_v62 = vpop.f32.mrb[81].mxu0 }
 0x19b   : > { %v2017_v1 = vmax.f32 %v1911_v56, 0.0  ;;  %v3751_v2 = vadd.f32 %v3750_v62, %v3749_v59  ;;  %v3752_v5 = vpop.f32.mrb[82].mxu0  ;;  %v4948_v3 = vpop.f32.mrb[80].mxu1 }
 0x19c   : > { %v3753_v4 = vpop.f32.mrb[83].mxu0  ;;  %v4951_v28 = vpop.f32.mrb[81].mxu1 }
 0x19d   : > { %v3754_v39 = vadd.f32 %v3753_v4, %v3752_v5  ;;  %v1755_v8 = vadd.f32 %v3751_v2, %v4844_v58  ;;  %v2045_v13 = vpack.c.bf16 %v2017_v1, %v2016_v63  ;;  %v4953_v36 = vpop.f32.mrb[82].mxu1 }
 0x19e   : > { %v4956_v17 = vpop.f32.mrb[83].mxu1 }
 0x19f   : > { %v1916_v42 = vadd.f32 %v1915_v11, %v1755_v8  ;;  %3965 = vmatmul.mubr.bf16.gmra.mrb[100].mxu1 %v2045_v13  ;;  %v1758_v44 = vadd.f32 %v3754_v39, %v4846_v61 }
 0x1a1   : > { %v1919_v18 = vadd.f32 %v1918_v19, %v1758_v44  ;;  %v3755_v21 = vpop.f32.mrb[84].mxu0  ;;  %v2018_v45 = vmax.f32 %v1916_v42, 0.0 }
 0x1a2   : > { %v3756_v24 = vpop.f32.mrb[85].mxu0 }
 0x1a3   : > { %v2019_v25 = vmax.f32 %v1919_v18, 0.0  ;;  %v3757_v29 = vadd.f32 %v3756_v24, %v3755_v21  ;;  %v3758_v20 = vpop.f32.mrb[86].mxu0  ;;  %v4958_v58 = vpop.f32.mrb[84].mxu1 }
 0x1a4   : > { %v3759_v30 = vpop.f32.mrb[87].mxu0  ;;  %v4961_v11 = vpop.f32.mrb[85].mxu1 }
 0x1a5   : > { %v2046_v48 = vpack.c.bf16 %v2019_v25, %v2018_v45  ;;  %v1763_v33 = vadd.f32 %v3757_v29, %v4850_v12  ;;  %v3760_v40 = vadd.f32 %v3759_v30, %v3758_v20  ;;  %v4963_v23 = vpop.f32.mrb[86].mxu1 }
 0x1a6   : > { %v4967_v41 = vpop.f32.mrb[87].mxu1 }
 0x1a7   : > { %v1924_v61 = vadd.f32 %v4933_v6, %v1763_v33  ;;  %v1766_v19 = vadd.f32 %v3760_v40, %v4852_v15  ;;  %3968 = vmatprep.mubr.bf16.mxu1 %v2046_v48 }
 0x1a9   : > { %v1927_v47 = vadd.f32 %v4936_v16, %v1766_v19  ;;  %v3761_v49 = vpop.f32.mrb[88].mxu0  ;;  %v2020_v59 = vmax.f32 %v1924_v61, 0.0 }
 0x1aa   : > { %v3762_v56 = vpop.f32.mrb[89].mxu0 }
 0x1ab   : > { %v2021_v62 = vmax.f32 %v1927_v47, 0.0  ;;  %v3763_v63 = vadd.f32 %v3762_v56, %v3761_v49  ;;  %v3764_v12 = vpop.f32.mrb[90].mxu0  ;;  %v4970_v2 = vpop.f32.mrb[88].mxu1 }
 0x1ac   : > { %v3765_v1 = vpop.f32.mrb[91].mxu0  ;;  %v4973_v39 = vpop.f32.mrb[89].mxu1 }
 0x1ad   : > { %v3766_v5 = vadd.f32 %v3765_v1, %v3764_v12  ;;  %v1771_v4 = vadd.f32 %v3763_v63, %v4856_v31  ;;  %v2047_v6 = vpack.c.bf16 %v2021_v62, %v2020_v59  ;;  %v4975_v15 = vpop.f32.mrb[90].mxu1 }
 0x1ae   : > { %v4978_v13 = vpop.f32.mrb[91].mxu1 }
 0x1af   : > { %v1932_v8 = vadd.f32 %v1931_v43, %v1771_v4  ;;  %3969 = vmatmul.mubr.bf16.gmra.mrb[104].mxu1 %v2047_v6  ;;  %v1774_v16 = vadd.f32 %v3766_v5, %v4858_v34 }
 0x1b1   : > { %v1935_v42 = vadd.f32 %v1934_v53, %v1774_v16  ;;  %v3767_v44 = vpop.f32.mrb[92].mxu0  ;;  %v2022_v21 = vmax.f32 %v1932_v8, 0.0 }
 0x1b2   : > { %v3768_v18 = vpop.f32.mrb[93].mxu0 }
 0x1b3   : > { %v2023_v24 = vmax.f32 %v1935_v42, 0.0  ;;  %v3769_v45 = vadd.f32 %v3768_v18, %v3767_v44  ;;  %v3770_v25 = vpop.f32.mrb[94].mxu0  ;;  %v4980_v31 = vpop.f32.mrb[92].mxu1 }
 0x1b4   : > { %v3771_v29 = vpop.f32.mrb[95].mxu0  ;;  %v4983_v43 = vpop.f32.mrb[93].mxu1 }
 0x1b5   : > { %v2048_v20 = vpack.c.bf16 %v2023_v24, %v2022_v21  ;;  %v1779_v30 = vadd.f32 %v3769_v45, %v4862_v51  ;;  %v3772_v48 = vadd.f32 %v3771_v29, %v3770_v25  ;;  %v4985_v33 = vpop.f32.mrb[94].mxu1 }
 0x1b6   : > { %v4989_v40 = vpop.f32.mrb[95].mxu1 }
 0x1b7   : > { %v1940_v34 = vadd.f32 %v4942_v37, %v1779_v30  ;;  %v1782_v53 = vadd.f32 %v3772_v48, %v4864_v54  ;;  %3972 = vmatprep.mubr.bf16.mxu1 %v2048_v20 }
 0x1b9   : > { %v1943_v61 = vadd.f32 %v4945_v46, %v1782_v53  ;;  %v3773_v19 = vpop.f32.mrb[96].mxu0  ;;  %v2024_v49 = vmax.f32 %v1940_v34, 0.0 }
 0x1ba   : > { %v3774_v47 = vpop.f32.mrb[97].mxu0 }
 0x1bb   : > { %v2025_v56 = vmax.f32 %v1943_v61, 0.0  ;;  %v3775_v59 = vadd.f32 %v3774_v47, %v3773_v19  ;;  %v3776_v51 = vpop.f32.mrb[98].mxu0 }
 0x1bc   : > { %v3777_v62 = vpop.f32.mrb[99].mxu0 }
 0x1bd   : > { %v3778_v63 = vadd.f32 %v3777_v62, %v3776_v51  ;;  %v1787_v12 = vadd.f32 %v3775_v59, %v4868_v7  ;;  %v2049_v1 = vpack.c.bf16 %v2025_v56, %v2024_v49 }
 0x1bf   : > { %v1948_v37 = vadd.f32 %v4951_v28, %v1787_v12  ;;  %3973 = vmatmul.mubr.bf16.gmra.mrb[108].mxu1 %v2049_v1  ;;  %v1790_v54 = vadd.f32 %v3778_v63, %v4870_v10 }
 0x1c1   : > { %v1951_v5 = vadd.f32 %v4956_v17, %v1790_v54  ;;  %v3779_v4 = vpop.f32.mrb[100].mxu0  ;;  %v2026_v6 = vmax.f32 %v1948_v37, 0.0 }
 0x1c2   : > { %v3780_v46 = vpop.f32.mrb[101].mxu0 }
 0x1c3   : > { %v2027_v8 = vmax.f32 %v1951_v5, 0.0  ;;  %v3781_v16 = vadd.f32 %v3780_v46, %v3779_v4  ;;  %v3782_v42 = vpop.f32.mrb[102].mxu0 }
 0x1c4   : > { %v3783_v44 = vpop.f32.mrb[103].mxu0 }
 0x1c5   : > { %v2050_v18 = vpack.c.bf16 %v2027_v8, %v2026_v6  ;;  %v1795_v21 = vadd.f32 %v3781_v16, %v4874_v27  ;;  %v3784_v24 = vadd.f32 %v3783_v44, %v3782_v42 }
 0x1c7   : > { %v1956_v7 = vadd.f32 %v4948_v3, %v1795_v21  ;;  %v1798_v28 = vadd.f32 %v3784_v24, %v4876_v32  ;;  %3976 = vmatprep.mubr.bf16.mxu1 %v2050_v18 }
 0x1c9   : > { %v1959_v10 = vadd.f32 %v4953_v36, %v1798_v28  ;;  %v3785_v45 = vpop.f32.mrb[104].mxu0  ;;  %v2028_v25 = vmax.f32 %v1956_v7, 0.0  ;;  %v4320_v28 = vld [vmem:[%s5464_s2 + $0x70] sm:$0xff]  }
 0x1ca   : > { %v3786_v17 = vpop.f32.mrb[105].mxu0  ;;  %4004 = vmatprep.subr.bf16.mxu0 %v4320_v28 }
 0x1cb   : > { %v2029_v29 = vmax.f32 %v1959_v10, 0.0  ;;  %v3787_v20 = vadd.f32 %v3786_v17, %v3785_v45  ;;  %v3788_v30 = vpop.f32.mrb[106].mxu0  ;;  %4005 = vmatpush3.bf16.msra.mxu0 %v4320_v28  ;;  %v4321_v45 = vld [vmem:[%s5464_s2 + $0x78] sm:$0xff]  }
 0x1cc   : > { %v3789_v48 = vpop.f32.mrb[107].mxu0  ;;  %4006 = vmatprep.subr.bf16.mxu0 %v4321_v45 }
 0x1cd   : > { %v3790_v34 = vadd.f32 %v3789_v48, %v3788_v30  ;;  %v1803_v53 = vadd.f32 %v3787_v20, %v4880_v50  ;;  %v2051_v61 = vpack.c.bf16 %v2029_v29, %v2028_v25 }
 0x1cf   : > { %v1964_v27 = vadd.f32 %v4961_v11, %v1803_v53  ;;  %3977 = vmatmul.mubr.bf16.gmra.mrb[112].mxu1 %v2051_v61  ;;  %v1806_v3 = vadd.f32 %v3790_v34, %v4882_v55  ;;  %4007 = vmatpush3.bf16.msra.mxu0 %v4321_v45 }
 0x1d1   : > { %v1967_v32 = vadd.f32 %v4967_v41, %v1806_v3  ;;  %v3791_v19 = vpop.f32.mrb[108].mxu0  ;;  %v2030_v47 = vmax.f32 %v1964_v27, 0.0 }
 0x1d2   : > { %v3792_v36 = vpop.f32.mrb[109].mxu0 }
 0x1d3   : > { %v2031_v49 = vmax.f32 %v1967_v32, 0.0  ;;  %v3793_v56 = vadd.f32 %v3792_v36, %v3791_v19  ;;  %v3794_v59 = vpop.f32.mrb[110].mxu0 }
 0x1d4   : > { %v3795_v51 = vpop.f32.mrb[111].mxu0 }
 0x1d5   : > { %v2052_v62 = vpack.c.bf16 %v2031_v49, %v2030_v47  ;;  %v1811_v63 = vadd.f32 %v3793_v56, %v4886_v9  ;;  %v3796_v12 = vadd.f32 %v3795_v51, %v3794_v59 }
 0x1d7   : > { %v1972_v50 = vadd.f32 %v4958_v58, %v1811_v63  ;;  %v1814_v11 = vadd.f32 %v3796_v12, %v4888_v14  ;;  %3980 = vmatprep.mubr.bf16.mxu1 %v2052_v62 }
 0x1d9   : > { %v1975_v55 = vadd.f32 %v4963_v23, %v1814_v11  ;;  %v3797_v1 = vpop.f32.mrb[112].mxu0  ;;  %v2032_v37 = vmax.f32 %v1972_v50, 0.0  ;;  %v4322_v50 = vld [vmem:[%s5465_s3] sm:$0xff]  }
 0x1da   : > { %v3798_v41 = vpop.f32.mrb[113].mxu0  ;;  %4040 = vmatprep.subr.bf16.mxu1 %v4322_v50 }
 0x1db   : > { %v2033_v54 = vmax.f32 %v1975_v55, 0.0  ;;  %v3799_v5 = vadd.f32 %v3798_v41, %v3797_v1  ;;  %v3800_v4 = vpop.f32.mrb[114].mxu0  ;;  %4041 = vmatpush3.bf16.msra.mxu1 %v4322_v50 }
 0x1dc   : > { %v3801_v46 = vpop.f32.mrb[115].mxu0 }
 0x1dd   : > { %v3802_v6 = vadd.f32 %v3801_v46, %v3800_v4  ;;  %v1819_v8 = vadd.f32 %v3799_v5, %v4892_v35  ;;  %v2053_v16 = vpack.c.bf16 %v2033_v54, %v2032_v37  ;;  %v4325_v5 = vld [vmem:[%s5465_s3 + $0x18] sm:$0xff]  }
 0x1df   : > { %v1980_v9 = vadd.f32 %v4973_v39, %v1819_v8  ;;  %3981 = vmatmul.mubr.bf16.gmra.mrb[116].mxu1 %v2053_v16  ;;  %v1822_v58 = vadd.f32 %v3802_v6, %v4894_v38 }
 0x1e1   : > { %v1983_v14 = vadd.f32 %v4978_v13, %v1822_v58  ;;  %v3803_v42 = vpop.f32.mrb[116].mxu0  ;;  %v2034_v44 = vmax.f32 %v1980_v9, 0.0  ;;  %v4326_v58 = vld [vmem:[%s5465_s3 + $0x20] sm:$0xff]  }
 0x1e2   : > { %v3804_v23 = vpop.f32.mrb[117].mxu0 }
 0x1e3   : > { %v2035_v18 = vmax.f32 %v1983_v14, 0.0  ;;  %v3805_v21 = vadd.f32 %v3804_v23, %v3803_v42  ;;  %v3806_v24 = vpop.f32.mrb[118].mxu0  ;;  %v4327_v42 = vld [vmem:[%s5465_s3 + $0x28] sm:$0xff]  }
 0x1e4   : > { %v3807_v7 = vpop.f32.mrb[119].mxu0 }
 0x1e5   : > { %v2054_v35 = vpack.c.bf16 %v2035_v18, %v2034_v44  ;;  %v1827_v10 = vadd.f32 %v3805_v21, %v4898_v60  ;;  %v3808_v39 = vadd.f32 %v3807_v7, %v3806_v24 }
 0x1e7   : > { %v1988_v38 = vadd.f32 %v4970_v2, %v1827_v10  ;;  %v1830_v13 = vadd.f32 %v3808_v39, %v4900_v0  ;;  %3984 = vmatprep.mubr.bf16.mxu1 %v2054_v35 }
 0x1e9   : > { %v1991_v17 = vadd.f32 %v4975_v15, %v1830_v13  ;;  %v3809_v25 = vpop.f32.mrb[120].mxu0  ;;  %v2036_v20 = vmax.f32 %v1988_v38, 0.0 }
 0x1ea   : > { %v3810_v29 = vpop.f32.mrb[121].mxu0 }
 0x1eb   : > { %v2037_v30 = vmax.f32 %v1991_v17, 0.0  ;;  %v3811_v60 = vadd.f32 %v3810_v29, %v3809_v25  ;;  %v3812_v48 = vpop.f32.mrb[122].mxu0 }
 0x1ec   : > { %v3813_v34 = vpop.f32.mrb[123].mxu0 }
 0x1ed   : > { %v3814_v2 = vadd.f32 %v3813_v34, %v3812_v48  ;;  %v1835_v0 = vadd.f32 %v3811_v60, %v4904_v22  ;;  %v2055_v53 = vpack.c.bf16 %v2037_v30, %v2036_v20 }
 0x1ef   : > { %v1996_v61 = vadd.f32 %v4983_v43, %v1835_v0  ;;  %3985 = vmatmul.mubr.bf16.gmra.mrb[120].mxu1 %v2055_v53  ;;  %v1838_v27 = vadd.f32 %v3814_v2, %v4906_v26 }
 0x1f1   : > { %v1999_v15 = vadd.f32 %v4989_v40, %v1838_v27  ;;  %v3815_v3 = vpop.f32.mrb[124].mxu0  ;;  %v2038_v19 = vmax.f32 %v1996_v61, 0.0 }
 0x1f2   : > { %v3816_v32 = vpop.f32.mrb[125].mxu0 }
 0x1f3   : > { %v2039_v36 = vmax.f32 %v1999_v15, 0.0  ;;  %v3817_v47 = vadd.f32 %v3816_v32, %v3815_v3  ;;  %v3818_v49 = vpop.f32.mrb[126].mxu0 }
 0x1f4   : > { %v3819_v56 = vpop.f32.mrb[127].mxu0 }
 0x1f5   : > { %v2056_v59 = vpack.c.bf16 %v2039_v36, %v2038_v19  ;;  %v1843_v51 = vadd.f32 %v3817_v47, %v4910_v52  ;;  %v3820_v62 = vadd.f32 %v3819_v56, %v3818_v49  ;;  %v4323_v52 = vld [vmem:[%s5465_s3 + $0x8] sm:$0xff]  }
 0x1f6   : > { %4042 = vmatprep.subr.bf16.mxu1 %v4323_v52 }
 0x1f7   : > { %v2004_v22 = vadd.f32 %v4980_v31, %v1843_v51  ;;  %v1846_v43 = vadd.f32 %v3820_v62, %v4912_v57  ;;  %3988 = vmatprep.mubr.bf16.mxu1 %v2056_v59  ;;  %v5039_v57 = vld [vmem:[%s5466_s4 + $0x1] ss:$0 sm:$0xff]  ;;  %v4324_v31 = vld [vmem:[%s5465_s3 + $0x10] sm:$0xff]   ;;  %4043 = vmatpush3.bf16.msra.mxu1 %v4323_v52 }
 0x1f8   : > { %4044 = vmatprep.subr.bf16.mxu1 %v4324_v31 }
 0x1f9   : > { %v2007_v26 = vadd.f32 %v4985_v33, %v1846_v43  ;;  %v2040_v63 = vmax.f32 %v2004_v22, 0.0 }
 0x1fb   : > { %v2041_v40 = vmax.f32 %v2007_v26, 0.0  ;;  %4045 = vmatpush3.bf16.msra.mxu1 %v4324_v31 }
 0x1fc   : > { %4046 = vmatprep.subr.bf16.mxu1 %v4325_v5 }
 0x1fd   : > { %v2057_v12 = vpack.c.bf16 %v2041_v40, %v2040_v63 }
 0x1ff   : > { %3989 = vmatmul.mubr.bf16.gmra.mrb[124].mxu1 %v2057_v12 }
 0x200   : > { %4047 = vmatpush3.bf16.msra.mxu1 %v4325_v5 }
 0x201   : > { %4048 = vmatprep.subr.bf16.mxu1 %v4326_v58 }
 0x204   : > { %4049 = vmatpush3.bf16.msra.mxu1 %v4326_v58 }
 0x205   : > { %4050 = vmatprep.subr.bf16.mxu1 %v4327_v42 }
 0x208   : > { %4051 = vmatpush3.bf16.msra.mxu1 %v4327_v42 }
 0x262   : > { %v3962_v33 = vpop.f32.mrb[96].mxu1 }
 0x263   : > { %v2170_v11 = vadd.f32 %v3962_v33, %v5039_v57  ;;  %v2161_v55 = vpop.f32.mrb[97].mxu1 }
 0x264   : > { %v2162_v1 = vadd.f32 %v5039_v57, %v2161_v55  ;;  %v3963_v41 = vpop.f32.mrb[98].mxu1 }
 0x265   : > { %v2173_v37 = vadd.f32 %v3963_v41, %v5039_v57  ;;  %v2164_v54 = vpop.f32.mrb[99].mxu1  ;;  %v2290_v46 = vmax.f32 %v2170_v11, 0.0 }
 0x266   : > { %v2165_v4 = vadd.f32 %v5039_v57, %v2164_v54  ;;  %v2288_v8 = vmax.f32 %v2162_v1, 0.0 }
 0x267   : > { %v2291_v6 = vmax.f32 %v2173_v37, 0.0 }
 0x268   : > { %v2289_v16 = vmax.f32 %v2165_v4, 0.0 }
 0x269   : > { %v2321_v9 = vpack.c.bf16 %v2291_v6, %v2290_v46 }
 0x26a   : > { %v2320_v14 = vpack.c.bf16 %v2289_v16, %v2288_v8 }
 0x26c   : > { %4008 = vmatprep.mubr.bf16.mxu0 %v2320_v14 }
 0x26d   : > { %4009 = vmatmul.mubr.bf16.vlgmr.msra.gmra.mrb[128].mxu0 %v2321_v9 }
 0x272   : > { %v3966_v23 = vpop.f32.mrb[100].mxu1 }
 0x273   : > { %v2186_v44 = vadd.f32 %v3966_v23, %v5039_v57  ;;  %v2177_v18 = vpop.f32.mrb[101].mxu1 }
 0x274   : > { %v2178_v21 = vadd.f32 %v5039_v57, %v2177_v18  ;;  %v3967_v24 = vpop.f32.mrb[102].mxu1 }
 0x275   : > { %v2189_v7 = vadd.f32 %v3967_v24, %v5039_v57  ;;  %v2180_v28 = vpop.f32.mrb[103].mxu1  ;;  %v2294_v10 = vmax.f32 %v2186_v44, 0.0 }
 0x276   : > { %v2181_v35 = vadd.f32 %v5039_v57, %v2180_v28  ;;  %v2292_v38 = vmax.f32 %v2178_v21, 0.0 }
 0x277   : > { %v2295_v39 = vmax.f32 %v2189_v7, 0.0 }
 0x278   : > { %v2293_v13 = vmax.f32 %v2181_v35, 0.0 }
 0x279   : > { %v2323_v45 = vpack.c.bf16 %v2295_v39, %v2294_v10  ;;  %v4328_v10 = vld [vmem:[%s5465_s3 + $0x30] sm:$0xff]  }
 0x27a   : > { %v2322_v17 = vpack.c.bf16 %v2293_v13, %v2292_v38  ;;  %4052 = vmatprep.subr.bf16.mxu1 %v4328_v10 }
 0x27b   : > { %4053 = vmatpush3.bf16.msra.mxu1 %v4328_v10 }
 0x27c   : > { %4012 = vmatprep.mubr.bf16.mxu0 %v2322_v17 }
 0x27d   : > { %4013 = vmatmul.mubr.bf16.gmra.mrb[132].mxu0 %v2323_v45 }
 0x282   : > { %v3970_v25 = vpop.f32.mrb[104].mxu1 }
 0x283   : > { %v2202_v29 = vadd.f32 %v3970_v25, %v5039_v57  ;;  %v2193_v20 = vpop.f32.mrb[105].mxu1 }
 0x284   : > { %v2194_v30 = vadd.f32 %v5039_v57, %v2193_v20  ;;  %v3971_v60 = vpop.f32.mrb[106].mxu1  ;;  %v4329_v20 = vld [vmem:[%s5465_s3 + $0x38] sm:$0xff]  }
 0x285   : > { %v2205_v48 = vadd.f32 %v3971_v60, %v5039_v57  ;;  %v2196_v34 = vpop.f32.mrb[107].mxu1  ;;  %v2298_v0 = vmax.f32 %v2202_v29, 0.0  ;;  %4054 = vmatprep.subr.bf16.mxu1 %v4329_v20 }
 0x286   : > { %v2197_v2 = vadd.f32 %v5039_v57, %v2196_v34  ;;  %v2296_v61 = vmax.f32 %v2194_v30, 0.0  ;;  %4055 = vmatpush3.bf16.msra.mxu1 %v4329_v20 }
 0x287   : > { %v2299_v53 = vmax.f32 %v2205_v48, 0.0 }
 0x288   : > { %v2297_v27 = vmax.f32 %v2197_v2, 0.0 }
 0x289   : > { %v2325_v15 = vpack.c.bf16 %v2299_v53, %v2298_v0 }
 0x28a   : > { %v2324_v3 = vpack.c.bf16 %v2297_v27, %v2296_v61 }
 0x28c   : > { %4016 = vmatprep.mubr.bf16.mxu0 %v2324_v3 }
 0x28d   : > { %4017 = vmatmul.mubr.bf16.gmra.mrb[136].mxu0 %v2325_v15 }
 0x292   : > { %v3974_v32 = vpop.f32.mrb[108].mxu1 }
 0x293   : > { %v2218_v19 = vadd.f32 %v3974_v32, %v5039_v57  ;;  %v2209_v36 = vpop.f32.mrb[109].mxu1 }
 0x294   : > { %v2210_v47 = vadd.f32 %v5039_v57, %v2209_v36  ;;  %v3975_v49 = vpop.f32.mrb[110].mxu1 }
 0x295   : > { %v2221_v56 = vadd.f32 %v3975_v49, %v5039_v57  ;;  %v2212_v59 = vpop.f32.mrb[111].mxu1  ;;  %v2302_v62 = vmax.f32 %v2218_v19, 0.0 }
 0x296   : > { %v2213_v51 = vadd.f32 %v5039_v57, %v2212_v59  ;;  %v2300_v43 = vmax.f32 %v2210_v47, 0.0 }
 0x297   : > { %v2303_v22 = vmax.f32 %v2221_v56, 0.0 }
 0x298   : > { %v2301_v26 = vmax.f32 %v2213_v51, 0.0 }
 0x299   : > { %v2327_v63 = vpack.c.bf16 %v2303_v22, %v2302_v62  ;;  %v5094_v22 = vld [vmem:[%s5466_s4 + $0x2] ss:$0 sm:$0xff] }
 0x29a   : > { %v2326_v40 = vpack.c.bf16 %v2301_v26, %v2300_v43 }
 0x29c   : > { %4020 = vmatprep.mubr.bf16.mxu0 %v2326_v40 }
 0x29d   : > { %4021 = vmatmul.mubr.bf16.gmra.mrb[140].mxu0 %v2327_v63 }
 0x2a2   : > { %v3978_v12 = vpop.f32.mrb[112].mxu1 }
 0x2a3   : > { %v2234_v50 = vadd.f32 %v3978_v12, %v5039_v57  ;;  %v2225_v52 = vpop.f32.mrb[113].mxu1 }
 0x2a4   : > { %v2226_v31 = vadd.f32 %v5039_v57, %v2225_v52  ;;  %v3979_v33 = vpop.f32.mrb[114].mxu1 }
 0x2a5   : > { %v2237_v11 = vadd.f32 %v3979_v33, %v5039_v57  ;;  %v2228_v55 = vpop.f32.mrb[115].mxu1  ;;  %v2306_v41 = vmax.f32 %v2234_v50, 0.0 }
 0x2a6   : > { %v2229_v1 = vadd.f32 %v5039_v57, %v2228_v55  ;;  %v2304_v54 = vmax.f32 %v2226_v31, 0.0 }
 0x2a7   : > { %v2307_v37 = vmax.f32 %v2237_v11, 0.0 }
 0x2a8   : > { %v2305_v5 = vmax.f32 %v2229_v1, 0.0 }
 0x2a9   : > { %v2329_v4 = vpack.c.bf16 %v2307_v37, %v2306_v41 }
 0x2aa   : > { %v2328_v46 = vpack.c.bf16 %v2305_v5, %v2304_v54 }
 0x2ac   : > { %4024 = vmatprep.mubr.bf16.mxu0 %v2328_v46 }
 0x2ad   : > { %4025 = vmatmul.mubr.bf16.gmra.mrb[144].mxu0 %v2329_v4 }
 0x2b2   : > { %v3982_v6 = vpop.f32.mrb[116].mxu1 }
 0x2b3   : > { %v2250_v8 = vadd.f32 %v3982_v6, %v5039_v57  ;;  %v2241_v16 = vpop.f32.mrb[117].mxu1 }
 0x2b4   : > { %v2242_v9 = vadd.f32 %v5039_v57, %v2241_v16  ;;  %v3983_v58 = vpop.f32.mrb[118].mxu1 }
 0x2b5   : > { %v2253_v14 = vadd.f32 %v3983_v58, %v5039_v57  ;;  %v2244_v42 = vpop.f32.mrb[119].mxu1  ;;  %v2310_v44 = vmax.f32 %v2250_v8, 0.0 }
 0x2b6   : > { %v2245_v23 = vadd.f32 %v5039_v57, %v2244_v42  ;;  %v2308_v21 = vmax.f32 %v2242_v9, 0.0 }
 0x2b7   : > { %v2311_v18 = vmax.f32 %v2253_v14, 0.0 }
 0x2b8   : > { %v2309_v24 = vmax.f32 %v2245_v23, 0.0 }
 0x2b9   : > { %v2331_v7 = vpack.c.bf16 %v2311_v18, %v2310_v44 }
 0x2ba   : > { %v2330_v28 = vpack.c.bf16 %v2309_v24, %v2308_v21 }
 0x2bc   : > { %4028 = vmatprep.mubr.bf16.mxu0 %v2330_v28 }
 0x2bd   : > { %4029 = vmatmul.mubr.bf16.gmra.mrb[148].mxu0 %v2331_v7 }
 0x2c2   : > { %v3986_v35 = vpop.f32.mrb[120].mxu1 }
 0x2c3   : > { %v2266_v39 = vadd.f32 %v3986_v35, %v5039_v57  ;;  %v2257_v38 = vpop.f32.mrb[121].mxu1 }
 0x2c4   : > { %v2258_v13 = vadd.f32 %v5039_v57, %v2257_v38  ;;  %v3987_v45 = vpop.f32.mrb[122].mxu1 }
 0x2c5   : > { %v2269_v17 = vadd.f32 %v3987_v45, %v5039_v57  ;;  %v2260_v25 = vpop.f32.mrb[123].mxu1  ;;  %v2314_v30 = vmax.f32 %v2266_v39, 0.0 }
 0x2c6   : > { %v2261_v29 = vadd.f32 %v5039_v57, %v2260_v25  ;;  %v2312_v48 = vmax.f32 %v2258_v13, 0.0 }
 0x2c7   : > { %v2315_v60 = vmax.f32 %v2269_v17, 0.0 }
 0x2c8   : > { %v2313_v34 = vmax.f32 %v2261_v29, 0.0 }
 0x2c9   : > { %v2333_v2 = vpack.c.bf16 %v2315_v60, %v2314_v30 }
 0x2ca   : > { %v2332_v0 = vpack.c.bf16 %v2313_v34, %v2312_v48 }
 0x2cc   : > { %4032 = vmatprep.mubr.bf16.mxu0 %v2332_v0 }
 0x2cd   : > { %4033 = vmatmul.mubr.bf16.gmra.mrb[152].mxu0 %v2333_v2 }
 0x2d2   : > { %v3990_v53 = vpop.f32.mrb[124].mxu1 }
 0x2d3   : > { %v2282_v61 = vadd.f32 %v3990_v53, %v5039_v57  ;;  %v2273_v27 = vpop.f32.mrb[125].mxu1 }
 0x2d4   : > { %v2274_v15 = vadd.f32 %v5039_v57, %v2273_v27  ;;  %v3991_v3 = vpop.f32.mrb[126].mxu1 }
 0x2d5   : > { %v2285_v32 = vadd.f32 %v3991_v3, %v5039_v57  ;;  %v2276_v19 = vpop.f32.mrb[127].mxu1  ;;  %v2318_v47 = vmax.f32 %v2282_v61, 0.0 }
 0x2d6   : > { %v2277_v36 = vadd.f32 %v5039_v57, %v2276_v19  ;;  %v2316_v56 = vmax.f32 %v2274_v15, 0.0 }
 0x2d7   : > { %v2319_v49 = vmax.f32 %v2285_v32, 0.0 }
 0x2d8   : > { %v2317_v59 = vmax.f32 %v2277_v36, 0.0 }
 0x2d9   : > { %v2335_v51 = vpack.c.bf16 %v2319_v49, %v2318_v47 }
 0x2da   : > { %v2334_v62 = vpack.c.bf16 %v2317_v59, %v2316_v56 }
 0x2dc   : > { %4036 = vmatprep.mubr.bf16.mxu0 %v2334_v62 }
 0x2dd   : > { %4037 = vmatmul.mubr.bf16.gmra.mrb[156].mxu0 %v2335_v51 }
 0x340   : > { %v4010_v43 = vpop.f32.mrb[128].mxu0 }
 0x341   : > { %v2449_v26 = vadd.f32 %v4010_v43, %v5094_v22  ;;  %v2440_v63 = vpop.f32.mrb[129].mxu0 }
 0x342   : > { %v2441_v40 = vadd.f32 %v5094_v22, %v2440_v63  ;;  %v4011_v57 = vpop.f32.mrb[130].mxu0 }
 0x343   : > { %v2452_v12 = vadd.f32 %v4011_v57, %v5094_v22  ;;  %v2443_v50 = vpop.f32.mrb[131].mxu0  ;;  %v2569_v31 = vmax.f32 %v2449_v26, 0.0 }
 0x344   : > { %v2444_v52 = vadd.f32 %v5094_v22, %v2443_v50  ;;  %v2567_v11 = vmax.f32 %v2441_v40, 0.0 }
 0x345   : > { %v2570_v33 = vmax.f32 %v2452_v12, 0.0 }
 0x346   : > { %v2568_v55 = vmax.f32 %v2444_v52, 0.0 }
 0x347   : > { %v2600_v1 = vpack.c.bf16 %v2570_v33, %v2569_v31 }
 0x348   : > { %v2599_v41 = vpack.c.bf16 %v2568_v55, %v2567_v11 }
 0x34a   : > { %4056 = vmatprep.mubr.bf16.mxu1 %v2599_v41 }
 0x34b   : > { %4057 = vmatmul.mubr.bf16.vlgmr.msra.gmra.mrb[128].mxu1 %v2600_v1 }
 0x350   : > { %v4014_v37 = vpop.f32.mrb[132].mxu0 }
 0x351   : > { %v2465_v54 = vadd.f32 %v4014_v37, %v5094_v22  ;;  %v2456_v5 = vpop.f32.mrb[133].mxu0 }
 0x352   : > { %v2457_v4 = vadd.f32 %v5094_v22, %v2456_v5  ;;  %v4015_v46 = vpop.f32.mrb[134].mxu0 }
 0x353   : > { %v2468_v6 = vadd.f32 %v4015_v46, %v5094_v22  ;;  %v2459_v8 = vpop.f32.mrb[135].mxu0  ;;  %v2573_v9 = vmax.f32 %v2465_v54, 0.0 }
 0x354   : > { %v2460_v16 = vadd.f32 %v5094_v22, %v2459_v8  ;;  %v2571_v14 = vmax.f32 %v2457_v4, 0.0 }
 0x355   : > { %v2574_v58 = vmax.f32 %v2468_v6, 0.0 }
 0x356   : > { %v2572_v42 = vmax.f32 %v2460_v16, 0.0 }
 0x357   : > { %v2602_v23 = vpack.c.bf16 %v2574_v58, %v2573_v9 }
 0x358   : > { %v2601_v44 = vpack.c.bf16 %v2572_v42, %v2571_v14 }
 0x35a   : > { %4060 = vmatprep.mubr.bf16.mxu1 %v2601_v44 }
 0x35b   : > { %4061 = vmatmul.mubr.bf16.gmra.mrb[132].mxu1 %v2602_v23 }
 0x360   : > { %v4018_v18 = vpop.f32.mrb[136].mxu0 }
 0x361   : > { %v2481_v21 = vadd.f32 %v4018_v18, %v5094_v22  ;;  %v2472_v24 = vpop.f32.mrb[137].mxu0 }
 0x362   : > { %v2473_v7 = vadd.f32 %v5094_v22, %v2472_v24  ;;  %v4019_v28 = vpop.f32.mrb[138].mxu0 }
 0x363   : > { %v2484_v35 = vadd.f32 %v4019_v28, %v5094_v22  ;;  %v2475_v10 = vpop.f32.mrb[139].mxu0  ;;  %v2577_v38 = vmax.f32 %v2481_v21, 0.0 }
 0x364   : > { %v2476_v39 = vadd.f32 %v5094_v22, %v2475_v10  ;;  %v2575_v45 = vmax.f32 %v2473_v7, 0.0 }
 0x365   : > { %v2578_v13 = vmax.f32 %v2484_v35, 0.0 }
 0x366   : > { %v2576_v17 = vmax.f32 %v2476_v39, 0.0 }
 0x367   : > { %v2604_v25 = vpack.c.bf16 %v2578_v13, %v2577_v38 }
 0x368   : > { %v2603_v29 = vpack.c.bf16 %v2576_v17, %v2575_v45 }
 0x36a   : > { %4064 = vmatprep.mubr.bf16.mxu1 %v2603_v29 }
 0x36b   : > { %4065 = vmatmul.mubr.bf16.gmra.mrb[136].mxu1 %v2604_v25 }
 0x370   : > { %v4022_v20 = vpop.f32.mrb[140].mxu0 }
 0x371   : > { %v2497_v30 = vadd.f32 %v4022_v20, %v5094_v22  ;;  %v2488_v60 = vpop.f32.mrb[141].mxu0 }
 0x372   : > { %v2489_v48 = vadd.f32 %v5094_v22, %v2488_v60  ;;  %v4023_v34 = vpop.f32.mrb[142].mxu0 }
 0x373   : > { %v2500_v2 = vadd.f32 %v4023_v34, %v5094_v22  ;;  %v2491_v0 = vpop.f32.mrb[143].mxu0  ;;  %v2581_v61 = vmax.f32 %v2497_v30, 0.0 }
 0x374   : > { %v2492_v53 = vadd.f32 %v5094_v22, %v2491_v0  ;;  %v2579_v15 = vmax.f32 %v2489_v48, 0.0 }
 0x375   : > { %v2582_v27 = vmax.f32 %v2500_v2, 0.0 }
 0x376   : > { %v2580_v3 = vmax.f32 %v2492_v53, 0.0  ;;  %v5131_v53 = vld [vmem:[%s5466_s4 + $0x3] ss:$0 sm:$0xff] }
 0x377   : > { %v2606_v32 = vpack.c.bf16 %v2582_v27, %v2581_v61 }
 0x378   : > { %v2605_v19 = vpack.c.bf16 %v2580_v3, %v2579_v15 }
 0x37a   : > { %4068 = vmatprep.mubr.bf16.mxu1 %v2605_v19 }
 0x37b   : > { %4069 = vmatmul.mubr.bf16.gmra.mrb[140].mxu1 %v2606_v32 }
 0x380   : > { %v4026_v36 = vpop.f32.mrb[144].mxu0 }
 0x381   : > { %v2513_v47 = vadd.f32 %v4026_v36, %v5094_v22  ;;  %v2504_v49 = vpop.f32.mrb[145].mxu0 }
 0x382   : > { %v2505_v56 = vadd.f32 %v5094_v22, %v2504_v49  ;;  %v4027_v59 = vpop.f32.mrb[146].mxu0 }
 0x383   : > { %v2516_v51 = vadd.f32 %v4027_v59, %v5094_v22  ;;  %v2507_v62 = vpop.f32.mrb[147].mxu0  ;;  %v2585_v26 = vmax.f32 %v2513_v47, 0.0 }
 0x384   : > { %v2508_v43 = vadd.f32 %v5094_v22, %v2507_v62  ;;  %v2583_v40 = vmax.f32 %v2505_v56, 0.0 }
 0x385   : > { %v2586_v63 = vmax.f32 %v2516_v51, 0.0 }
 0x386   : > { %v2584_v57 = vmax.f32 %v2508_v43, 0.0 }
 0x387   : > { %v2608_v12 = vpack.c.bf16 %v2586_v63, %v2585_v26 }
 0x388   : > { %v2607_v50 = vpack.c.bf16 %v2584_v57, %v2583_v40 }
 0x38a   : > { %4072 = vmatprep.mubr.bf16.mxu1 %v2607_v50 }
 0x38b   : > { %4073 = vmatmul.mubr.bf16.gmra.mrb[144].mxu1 %v2608_v12 }
 0x390   : > { %v4030_v52 = vpop.f32.mrb[148].mxu0 }
 0x391   : > { %v2529_v31 = vadd.f32 %v4030_v52, %v5094_v22  ;;  %v2520_v33 = vpop.f32.mrb[149].mxu0 }
 0x392   : > { %v2521_v11 = vadd.f32 %v5094_v22, %v2520_v33  ;;  %v4031_v55 = vpop.f32.mrb[150].mxu0 }
 0x393   : > { %v2532_v1 = vadd.f32 %v4031_v55, %v5094_v22  ;;  %v2523_v41 = vpop.f32.mrb[151].mxu0  ;;  %v2589_v54 = vmax.f32 %v2529_v31, 0.0 }
 0x394   : > { %v2524_v37 = vadd.f32 %v5094_v22, %v2523_v41  ;;  %v2587_v4 = vmax.f32 %v2521_v11, 0.0 }
 0x395   : > { %v2590_v5 = vmax.f32 %v2532_v1, 0.0 }
 0x396   : > { %v2588_v46 = vmax.f32 %v2524_v37, 0.0 }
 0x397   : > { %v2610_v6 = vpack.c.bf16 %v2590_v5, %v2589_v54 }
 0x398   : > { %v2609_v8 = vpack.c.bf16 %v2588_v46, %v2587_v4 }
 0x39a   : > { %4076 = vmatprep.mubr.bf16.mxu1 %v2609_v8 }
 0x39b   : > { %4077 = vmatmul.mubr.bf16.gmra.mrb[148].mxu1 %v2610_v6 }
 0x3a0   : > { %v4034_v16 = vpop.f32.mrb[152].mxu0 }
 0x3a1   : > { %v2545_v9 = vadd.f32 %v4034_v16, %v5094_v22  ;;  %v2536_v58 = vpop.f32.mrb[153].mxu0 }
 0x3a2   : > { %v2537_v14 = vadd.f32 %v5094_v22, %v2536_v58  ;;  %v4035_v42 = vpop.f32.mrb[154].mxu0 }
 0x3a3   : > { %v2548_v23 = vadd.f32 %v4035_v42, %v5094_v22  ;;  %v2539_v44 = vpop.f32.mrb[155].mxu0  ;;  %v2593_v21 = vmax.f32 %v2545_v9, 0.0 }
 0x3a4   : > { %v2540_v18 = vadd.f32 %v5094_v22, %v2539_v44  ;;  %v2591_v7 = vmax.f32 %v2537_v14, 0.0 }
 0x3a5   : > { %v2594_v24 = vmax.f32 %v2548_v23, 0.0 }
 0x3a6   : > { %v2592_v28 = vmax.f32 %v2540_v18, 0.0 }
 0x3a7   : > { %v2612_v35 = vpack.c.bf16 %v2594_v24, %v2593_v21 }
 0x3a8   : > { %v2611_v10 = vpack.c.bf16 %v2592_v28, %v2591_v7 }
 0x3aa   : > { %4080 = vmatprep.mubr.bf16.mxu1 %v2611_v10 }
 0x3ab   : > { %4081 = vmatmul.mubr.bf16.gmra.mrb[152].mxu1 %v2612_v35 }
 0x3b0   : > { %v4038_v39 = vpop.f32.mrb[156].mxu0 }
 0x3b1   : > { %v2561_v38 = vadd.f32 %v4038_v39, %v5094_v22  ;;  %v2552_v13 = vpop.f32.mrb[157].mxu0 }
 0x3b2   : > { %v2553_v45 = vadd.f32 %v5094_v22, %v2552_v13  ;;  %v4039_v17 = vpop.f32.mrb[158].mxu0 }
 0x3b3   : > { %v2564_v25 = vadd.f32 %v4039_v17, %v5094_v22  ;;  %v2555_v29 = vpop.f32.mrb[159].mxu0  ;;  %v2597_v30 = vmax.f32 %v2561_v38, 0.0 }
 0x3b4   : > { %v2556_v20 = vadd.f32 %v5094_v22, %v2555_v29  ;;  %v2595_v48 = vmax.f32 %v2553_v45, 0.0 }
 0x3b5   : > { %v2598_v60 = vmax.f32 %v2564_v25, 0.0 }
 0x3b6   : > { %v2596_v34 = vmax.f32 %v2556_v20, 0.0 }
 0x3b7   : > { %v2614_v2 = vpack.c.bf16 %v2598_v60, %v2597_v30 }
 0x3b8   : > { %v2613_v0 = vpack.c.bf16 %v2596_v34, %v2595_v48 }
 0x3ba   : > { %4084 = vmatprep.mubr.bf16.mxu1 %v2613_v0 }
 0x3bb   : > { %4085 = vmatmul.mubr.bf16.gmra.mrb[156].mxu1 %v2614_v2 }
 0x41e   : > { %v4058_v61 = vpop.f32.mrb[128].mxu1 }
 0x41f   : > { %v5134_v27 = vadd.f32 %v4058_v61, %v5131_v53  ;;  %v2718_v15 = vpop.f32.mrb[129].mxu1 }
 0x420   : > { %v5137_v22 = vadd.f32 %v5131_v53, %v2718_v15  ;;  %v4059_v3 = vpop.f32.mrb[130].mxu1 }
 0x421   : > { %2849 = vmax.xlane.f32.xlu1 %v5134_v27  ;;  %v2721_v32 = vpop.f32.mrb[131].mxu1  ;;  %v5142_v19 = vadd.f32 %v4059_v3, %v5131_v53 }
 0x422   : > { %2845 = vmax.xlane.f32.xlu0 %v5137_v22  ;;  %v5145_v36 = vadd.f32 %v5131_v53, %v2721_v32 }
 0x425   : > { %2851 = vmax.xlane.f32.xlu1 %v5142_v19 }
 0x426   : > { %2847 = vmax.xlane.f32.xlu0 %v5145_v36 }
 0x42e   : > { %v4062_v47 = vpop.f32.mrb[132].mxu1 }
 0x42f   : > { %v5150_v49 = vadd.f32 %v4062_v47, %v5131_v53  ;;  %v2734_v56 = vpop.f32.mrb[133].mxu1 }
 0x430   : > { %v4063_v59 = vpop.f32.mrb[134].mxu1  ;;  %v5157_v43 = vadd.f32 %v5131_v53, %v2734_v56 }
 0x431   : > { %v5153_v51 = vadd.f32 %v4063_v59, %v5131_v53  ;;  %v2737_v62 = vpop.f32.mrb[135].mxu1  ;;  %2857 = vmax.xlane.f32.xlu0 %v5150_v49 }
 0x432   : > { %v5161_v26 = vadd.f32 %v5131_v53, %v2737_v62 }
 0x433   : > { %2859 = vmax.xlane.f32.xlu1 %v5153_v51 }
 0x435   : > { %2853 = vmax.xlane.f32.xlu0 %v5157_v43 }
 0x437   : > { %2855 = vmax.xlane.f32.xlu1 %v5161_v26 }
 0x43e   : > { %v4066_v63 = vpop.f32.mrb[136].mxu1 }
 0x43f   : > { %v5166_v40 = vadd.f32 %v4066_v63, %v5131_v53  ;;  %v2750_v57 = vpop.f32.mrb[137].mxu1 }
 0x440   : > { %v4067_v12 = vpop.f32.mrb[138].mxu1  ;;  %v5173_v31 = vadd.f32 %v5131_v53, %v2750_v57 }
 0x441   : > { %v5169_v50 = vadd.f32 %v4067_v12, %v5131_v53  ;;  %v2753_v52 = vpop.f32.mrb[139].mxu1  ;;  %2865 = vmax.xlane.f32.xlu0 %v5166_v40 }
 0x442   : > { %v5177_v33 = vadd.f32 %v5131_v53, %v2753_v52 }
 0x443   : > { %2867 = vmax.xlane.f32.xlu1 %v5169_v50 }
 0x445   : > { %2861 = vmax.xlane.f32.xlu0 %v5173_v31 }
 0x447   : > { %2863 = vmax.xlane.f32.xlu1 %v5177_v33 }
 0x44e   : > { %v4070_v11 = vpop.f32.mrb[140].mxu1 }
 0x44f   : > { %v5182_v55 = vadd.f32 %v4070_v11, %v5131_v53  ;;  %v2766_v1 = vpop.f32.mrb[141].mxu1 }
 0x450   : > { %v4071_v41 = vpop.f32.mrb[142].mxu1  ;;  %v5189_v5 = vadd.f32 %v5131_v53, %v2766_v1 }
 0x451   : > { %v5185_v37 = vadd.f32 %v4071_v41, %v5131_v53  ;;  %v2769_v54 = vpop.f32.mrb[143].mxu1  ;;  %2873 = vmax.xlane.f32.xlu0 %v5182_v55 }
 0x452   : > { %v5193_v4 = vadd.f32 %v5131_v53, %v2769_v54 }
 0x453   : > { %2875 = vmax.xlane.f32.xlu1 %v5185_v37 }
 0x455   : > { %2869 = vmax.xlane.f32.xlu0 %v5189_v5 }
 0x457   : > { %2871 = vmax.xlane.f32.xlu1 %v5193_v4 }
 0x45e   : > { %v4074_v46 = vpop.f32.mrb[144].mxu1 }
 0x45f   : > { %v5198_v6 = vadd.f32 %v4074_v46, %v5131_v53  ;;  %v2782_v8 = vpop.f32.mrb[145].mxu1 }
 0x460   : > { %v4075_v16 = vpop.f32.mrb[146].mxu1  ;;  %v5205_v14 = vadd.f32 %v5131_v53, %v2782_v8 }
 0x461   : > { %v5201_v9 = vadd.f32 %v4075_v16, %v5131_v53  ;;  %v2785_v58 = vpop.f32.mrb[147].mxu1  ;;  %2881 = vmax.xlane.f32.xlu0 %v5198_v6 }
 0x462   : > { %v5209_v42 = vadd.f32 %v5131_v53, %v2785_v58 }
 0x463   : > { %2883 = vmax.xlane.f32.xlu1 %v5201_v9 }
 0x465   : > { %2877 = vmax.xlane.f32.xlu0 %v5205_v14 }
 0x467   : > { %2879 = vmax.xlane.f32.xlu1 %v5209_v42 }
 0x46e   : > { %v4078_v23 = vpop.f32.mrb[148].mxu1 }
 0x46f   : > { %v5214_v44 = vadd.f32 %v4078_v23, %v5131_v53  ;;  %v2798_v18 = vpop.f32.mrb[149].mxu1 }
 0x470   : > { %v4079_v21 = vpop.f32.mrb[150].mxu1  ;;  %v5221_v28 = vadd.f32 %v5131_v53, %v2798_v18 }
 0x471   : > { %v5217_v24 = vadd.f32 %v4079_v21, %v5131_v53  ;;  %v2801_v7 = vpop.f32.mrb[151].mxu1  ;;  %2889 = vmax.xlane.f32.xlu0 %v5214_v44 }
 0x472   : > { %v5225_v35 = vadd.f32 %v5131_v53, %v2801_v7 }
 0x473   : > { %2891 = vmax.xlane.f32.xlu1 %v5217_v24 }
 0x475   : > { %2885 = vmax.xlane.f32.xlu0 %v5221_v28 }
 0x477   : > { %2887 = vmax.xlane.f32.xlu1 %v5225_v35 }
 0x47e   : > { %v4082_v10 = vpop.f32.mrb[152].mxu1 }
 0x47f   : > { %v5230_v39 = vadd.f32 %v4082_v10, %v5131_v53  ;;  %v2814_v38 = vpop.f32.mrb[153].mxu1 }
 0x480   : > { %v4083_v13 = vpop.f32.mrb[154].mxu1  ;;  %v5237_v25 = vadd.f32 %v5131_v53, %v2814_v38 }
 0x481   : > { %v5233_v45 = vadd.f32 %v4083_v13, %v5131_v53  ;;  %v2817_v17 = vpop.f32.mrb[155].mxu1  ;;  %2897 = vmax.xlane.f32.xlu0 %v5230_v39 }
 0x482   : > { %v5241_v29 = vadd.f32 %v5131_v53, %v2817_v17 }
 0x483   : > { %2899 = vmax.xlane.f32.xlu1 %v5233_v45 }
 0x485   : > { %2893 = vmax.xlane.f32.xlu0 %v5237_v25 }
 0x487   : > { %2895 = vmax.xlane.f32.xlu1 %v5241_v29 }
 0x48e   : > { %v4086_v20 = vpop.f32.mrb[156].mxu1 }
 0x48f   : > { %v2830_v30 = vpop.f32.mrb[157].mxu1  ;;  %v5253_v0 = vadd.f32 %v4086_v20, %v5131_v53 }
 0x490   : > { %v5246_v60 = vadd.f32 %v5131_v53, %v2830_v30  ;;  %v4087_v48 = vpop.f32.mrb[158].mxu1 }
 0x491   : > { %v2833_v34 = vpop.f32.mrb[159].mxu1  ;;  %v5257_v61 = vadd.f32 %v4087_v48, %v5131_v53 }
 0x492   : > { %v5249_v2 = vadd.f32 %v5131_v53, %v2833_v34  ;;  %2901 = vmax.xlane.f32.xlu0 %v5246_v60 }
 0x494   : > { %2903 = vmax.xlane.f32.xlu1 %v5249_v2 }
 0x496   : > { %2905 = vmax.xlane.f32.xlu0 %v5253_v0 }
 0x498   : > { %2907 = vmax.xlane.f32.xlu1 %v5257_v61 }
 0x4ae   : > { %v2850_v15 = vpop.xlane.xlu1 %2849 }
 0x4af   : > { %v5262_v3 = vsub.f32 %v5134_v27, %v2850_v15  ;;  %v2846_v32 = vpop.xlane.xlu0 %2845 }
 0x4b0   : > { %v5265_v47 = vsub.f32 %v5137_v22, %v2846_v32 }
 0x4b1   : > { %v2945_v56 = vmul.f32 1.442695, %v5262_v3 }
 0x4b2   : > { %v2941_v59 = vmul.f32 1.442695, %v5265_v47  ;;  %v2852_v62 = vpop.xlane.xlu1 %2851 }
 0x4b3   : > { %4330 = vpow2.f32 %v2945_v56  ;;  %v5270_v53 = vsub.f32 %v5142_v19, %v2852_v62  ;;  %v2848_v63 = vpop.xlane.xlu0 %2847 }
 0x4b4   : > { %v5273_v57 = vsub.f32 %v5145_v36, %v2848_v63  ;;  %4332 = vpow2.f32 %v2941_v59 }
 0x4b5   : > { %v2947_v27 = vmul.f32 1.442695, %v5270_v53 }
 0x4b6   : > { %v2943_v22 = vmul.f32 1.442695, %v5273_v57 }
 0x4b7   : > { %4334 = vpow2.f32 %v2947_v27 }
 0x4b8   : > { %4336 = vpow2.f32 %v2943_v22 }
 0x4bd   : > { %v4331_v12 = vpop.eup %4330 }
 0x4be   : > { %3009 = vadd.xlane.f32.xlu0 %v4331_v12  ;;  %v2858_v52 = vpop.xlane.xlu0 %2857  ;;  %v4333_v1 = vpop.eup %4332 }
 0x4bf   : > { %v5278_v11 = vsub.f32 %v5150_v49, %v2858_v52 }
 0x4c0   : > { %v2860_v19 = vpop.xlane.xlu1 %2859 }
 0x4c1   : > { %v4335_v41 = vpop.eup %4334  ;;  %v2953_v54 = vmul.f32 1.442695, %v5278_v11  ;;  %v5282_v36 = vsub.f32 %v5153_v51, %v2860_v19 }
 0x4c2   : > { %3011 = vadd.xlane.f32.xlu1 %v4335_v41  ;;  %3005 = vadd.xlane.f32.xlu0 %v4333_v1  ;;  %v2854_v46 = vpop.xlane.xlu0 %2853  ;;  %v4337_v49 = vpop.eup %4336 }
 0x4c3   : > { %4338 = vpow2.f32 %v2953_v54  ;;  %v2955_v8 = vmul.f32 1.442695, %v5282_v36  ;;  %v5286_v16 = vsub.f32 %v5157_v43, %v2854_v46 }
 0x4c4   : > { %v2856_v58 = vpop.xlane.xlu1 %2855 }
 0x4c5   : > { %4340 = vpow2.f32 %v2955_v8  ;;  %v2949_v23 = vmul.f32 1.442695, %v5286_v16  ;;  %v5290_v18 = vsub.f32 %v5161_v26, %v2856_v58 }
 0x4c6   : > { %3007 = vadd.xlane.f32.xlu1 %v4337_v49 }
 0x4c7   : > { %4342 = vpow2.f32 %v2949_v23  ;;  %v2951_v51 = vmul.f32 1.442695, %v5290_v18 }
 0x4c9   : > { %4344 = vpow2.f32 %v2951_v51 }
 0x4cd   : > { %v4339_v21 = vpop.eup %4338 }
 0x4ce   : > { %3017 = vadd.xlane.f32.xlu0 %v4339_v21  ;;  %v2866_v7 = vpop.xlane.xlu0 %2865 }
 0x4cf   : > { %v4341_v10 = vpop.eup %4340  ;;  %v5294_v43 = vsub.f32 %v5166_v40, %v2866_v7 }
 0x4d0   : > { %v2868_v38 = vpop.xlane.xlu1 %2867  ;;  %3019 = vadd.xlane.f32.xlu1 %v4341_v10 }
 0x4d1   : > { %v4343_v13 = vpop.eup %4342  ;;  %v2961_v17 = vmul.f32 1.442695, %v5294_v43  ;;  %v5298_v26 = vsub.f32 %v5169_v50, %v2868_v38 }
 0x4d2   : > { %3013 = vadd.xlane.f32.xlu0 %v4343_v13  ;;  %v2862_v20 = vpop.xlane.xlu0 %2861 }
 0x4d3   : > { %v4345_v30 = vpop.eup %4344  ;;  %4346 = vpow2.f32 %v2961_v17  ;;  %v2963_v48 = vmul.f32 1.442695, %v5298_v26  ;;  %v5302_v34 = vsub.f32 %v5173_v31, %v2862_v20 }
 0x4d4   : > { %v2864_v15 = vpop.xlane.xlu1 %2863  ;;  %3015 = vadd.xlane.f32.xlu1 %v4345_v30 }
 0x4d5   : > { %4348 = vpow2.f32 %v2963_v48  ;;  %v2957_v40 = vmul.f32 1.442695, %v5302_v34  ;;  %v5306_v32 = vsub.f32 %v5177_v33, %v2864_v15 }
 0x4d7   : > { %4350 = vpow2.f32 %v2957_v40  ;;  %v2959_v50 = vmul.f32 1.442695, %v5306_v32 }
 0x4d9   : > { %4352 = vpow2.f32 %v2959_v50 }
 0x4dd   : > { %v4347_v56 = vpop.eup %4346 }
 0x4de   : > { %3025 = vadd.xlane.f32.xlu0 %v4347_v56  ;;  %v2874_v59 = vpop.xlane.xlu0 %2873 }
 0x4df   : > { %v4349_v62 = vpop.eup %4348  ;;  %v5310_v63 = vsub.f32 %v5182_v55, %v2874_v59 }
 0x4e0   : > { %v2876_v31 = vpop.xlane.xlu1 %2875  ;;  %3027 = vadd.xlane.f32.xlu1 %v4349_v62 }
 0x4e1   : > { %v4351_v27 = vpop.eup %4350  ;;  %v2969_v22 = vmul.f32 1.442695, %v5310_v63  ;;  %v5314_v12 = vsub.f32 %v5185_v37, %v2876_v31 }
 0x4e2   : > { %3021 = vadd.xlane.f32.xlu0 %v4351_v27  ;;  %v2870_v33 = vpop.xlane.xlu0 %2869 }
 0x4e3   : > { %v4353_v52 = vpop.eup %4352  ;;  %4354 = vpow2.f32 %v2969_v22  ;;  %v2971_v1 = vmul.f32 1.442695, %v5314_v12  ;;  %v5318_v19 = vsub.f32 %v5189_v5, %v2870_v33 }
 0x4e4   : > { %v2872_v41 = vpop.xlane.xlu1 %2871  ;;  %3023 = vadd.xlane.f32.xlu1 %v4353_v52 }
 0x4e5   : > { %4356 = vpow2.f32 %v2971_v1  ;;  %v2965_v55 = vmul.f32 1.442695, %v5318_v19  ;;  %v5322_v54 = vsub.f32 %v5193_v4, %v2872_v41 }
 0x4e7   : > { %4358 = vpow2.f32 %v2965_v55  ;;  %v2967_v37 = vmul.f32 1.442695, %v5322_v54 }
 0x4e9   : > { %4360 = vpow2.f32 %v2967_v37 }
 0x4ed   : > { %v4355_v46 = vpop.eup %4354 }
 0x4ee   : > { %3033 = vadd.xlane.f32.xlu0 %v4355_v46  ;;  %v2882_v8 = vpop.xlane.xlu0 %2881 }
 0x4ef   : > { %v4357_v58 = vpop.eup %4356  ;;  %v5326_v49 = vsub.f32 %v5198_v6, %v2882_v8 }
 0x4f0   : > { %v2884_v5 = vpop.xlane.xlu1 %2883  ;;  %3035 = vadd.xlane.f32.xlu1 %v4357_v58 }
 0x4f1   : > { %v4359_v23 = vpop.eup %4358  ;;  %v2977_v51 = vmul.f32 1.442695, %v5326_v49  ;;  %v5330_v21 = vsub.f32 %v5201_v9, %v2884_v5 }
 0x4f2   : > { %3029 = vadd.xlane.f32.xlu0 %v4359_v23  ;;  %v2878_v4 = vpop.xlane.xlu0 %2877 }
 0x4f3   : > { %v4361_v7 = vpop.eup %4360  ;;  %4362 = vpow2.f32 %v2977_v51  ;;  %v2979_v10 = vmul.f32 1.442695, %v5330_v21  ;;  %v5334_v38 = vsub.f32 %v5205_v14, %v2878_v4 }
 0x4f4   : > { %v2880_v13 = vpop.xlane.xlu1 %2879  ;;  %3031 = vadd.xlane.f32.xlu1 %v4361_v7 }
 0x4f5   : > { %4364 = vpow2.f32 %v2979_v10  ;;  %v2973_v6 = vmul.f32 1.442695, %v5334_v38  ;;  %v5338_v17 = vsub.f32 %v5209_v42, %v2880_v13 }
 0x4f7   : > { %4366 = vpow2.f32 %v2973_v6  ;;  %v2975_v9 = vmul.f32 1.442695, %v5338_v17 }
 0x4f9   : > { %4368 = vpow2.f32 %v2975_v9 }
 0x4fd   : > { %v4363_v20 = vpop.eup %4362 }
 0x4fe   : > { %3041 = vadd.xlane.f32.xlu0 %v4363_v20  ;;  %v2890_v30 = vpop.xlane.xlu0 %2889 }
 0x4ff   : > { %v4365_v48 = vpop.eup %4364  ;;  %v5342_v15 = vsub.f32 %v5214_v44, %v2890_v30 }
 0x500   : > { %v2892_v14 = vpop.xlane.xlu1 %2891  ;;  %3043 = vadd.xlane.f32.xlu1 %v4365_v48 }
 0x501   : > { %v4367_v40 = vpop.eup %4366  ;;  %v2985_v50 = vmul.f32 1.442695, %v5342_v15  ;;  %v5346_v56 = vsub.f32 %v5217_v24, %v2892_v14 }
 0x502   : > { %3037 = vadd.xlane.f32.xlu0 %v4367_v40  ;;  %v2886_v42 = vpop.xlane.xlu0 %2885 }
 0x503   : > { %v4369_v59 = vpop.eup %4368  ;;  %4370 = vpow2.f32 %v2985_v50  ;;  %v2987_v62 = vmul.f32 1.442695, %v5346_v56  ;;  %v5350_v31 = vsub.f32 %v5221_v28, %v2886_v42 }
 0x504   : > { %v2888_v27 = vpop.xlane.xlu1 %2887  ;;  %3039 = vadd.xlane.f32.xlu1 %v4369_v59 }
 0x505   : > { %4372 = vpow2.f32 %v2987_v62  ;;  %v2981_v44 = vmul.f32 1.442695, %v5350_v31  ;;  %v5354_v22 = vsub.f32 %v5225_v35, %v2888_v27 }
 0x507   : > { %4374 = vpow2.f32 %v2981_v44  ;;  %v2983_v24 = vmul.f32 1.442695, %v5354_v22 }
 0x509   : > { %4376 = vpow2.f32 %v2983_v24 }
 0x50d   : > { %v4371_v33 = vpop.eup %4370 }
 0x50e   : > { %3049 = vadd.xlane.f32.xlu0 %v4371_v33  ;;  %v2898_v52 = vpop.xlane.xlu0 %2897 }
 0x50f   : > { %v4373_v1 = vpop.eup %4372  ;;  %v5358_v41 = vsub.f32 %v5230_v39, %v2898_v52 }
 0x510   : > { %v2900_v28 = vpop.xlane.xlu1 %2899  ;;  %3051 = vadd.xlane.f32.xlu1 %v4373_v1 }
 0x511   : > { %v4375_v55 = vpop.eup %4374  ;;  %v2993_v37 = vmul.f32 1.442695, %v5358_v41  ;;  %v5362_v46 = vsub.f32 %v5233_v45, %v2900_v28 }
 0x512   : > { %3045 = vadd.xlane.f32.xlu0 %v4375_v55  ;;  %v2894_v35 = vpop.xlane.xlu0 %2893 }
 0x513   : > { %v4377_v8 = vpop.eup %4376  ;;  %4378 = vpow2.f32 %v2993_v37  ;;  %v2995_v58 = vmul.f32 1.442695, %v5362_v46  ;;  %v5366_v5 = vsub.f32 %v5237_v25, %v2894_v35 }
 0x514   : > { %v2896_v23 = vpop.xlane.xlu1 %2895  ;;  %3047 = vadd.xlane.f32.xlu1 %v4377_v8 }
 0x515   : > { %4380 = vpow2.f32 %v2995_v58  ;;  %v2989_v39 = vmul.f32 1.442695, %v5366_v5  ;;  %v5370_v51 = vsub.f32 %v5241_v29, %v2896_v23 }
 0x517   : > { %4382 = vpow2.f32 %v2989_v39  ;;  %v2991_v45 = vmul.f32 1.442695, %v5370_v51 }
 0x519   : > { %4384 = vpow2.f32 %v2991_v45 }
 0x51d   : > { %v4379_v4 = vpop.eup %4378 }
 0x51e   : > { %3057 = vadd.xlane.f32.xlu0 %v4379_v4 }
 0x51f   : > { %v4381_v7 = vpop.eup %4380  ;;  %v2902_v10 = vpop.xlane.xlu0 %2901 }
 0x520   : > { %v5374_v13 = vsub.f32 %v5246_v60, %v2902_v10  ;;  %3059 = vadd.xlane.f32.xlu1 %v4381_v7 }
 0x521   : > { %v4383_v25 = vpop.eup %4382  ;;  %v2904_v6 = vpop.xlane.xlu1 %2903 }
 0x522   : > { %v2997_v9 = vmul.f32 1.442695, %v5374_v13  ;;  %v5378_v20 = vsub.f32 %v5249_v2, %v2904_v6  ;;  %3053 = vadd.xlane.f32.xlu0 %v4383_v25 }
 0x523   : > { %v4385_v29 = vpop.eup %4384  ;;  %v2906_v30 = vpop.xlane.xlu0 %2905 }
 0x524   : > { %4386 = vpow2.f32 %v2997_v9  ;;  %v2999_v48 = vmul.f32 1.442695, %v5378_v20  ;;  %v5382_v14 = vsub.f32 %v5253_v0, %v2906_v30  ;;  %3055 = vadd.xlane.f32.xlu1 %v4385_v29 }
 0x525   : > { %v2908_v60 = vpop.xlane.xlu1 %2907 }
 0x526   : > { %4388 = vpow2.f32 %v2999_v48  ;;  %v3001_v40 = vmul.f32 1.442695, %v5382_v14  ;;  %v5386_v50 = vsub.f32 %v5257_v61, %v2908_v60 }
 0x528   : > { %4390 = vpow2.f32 %v3001_v40  ;;  %v3003_v2 = vmul.f32 1.442695, %v5386_v50 }
 0x52a   : > { %4392 = vpow2.f32 %v3003_v2 }
 0x52e   : > { %v4387_v42 = vpop.eup %4386 }
 0x52f   : > { %3061 = vadd.xlane.f32.xlu0 %v4387_v42 }
 0x530   : > { %v4389_v59 = vpop.eup %4388 }
 0x531   : > { %3063 = vadd.xlane.f32.xlu1 %v4389_v59 }
 0x532   : > { %v4391_v62 = vpop.eup %4390 }
 0x533   : > { %3065 = vadd.xlane.f32.xlu0 %v4391_v62 }
 0x534   : > { %v4393_v0 = vpop.eup %4392 }
 0x535   : > { %3067 = vadd.xlane.f32.xlu1 %v4393_v0 }
 0x54b   : > { %v3010_v27 = vpop.xlane.xlu0 %3009 }
 0x54c   : > { %4394 = vlog2.f32 %v3010_v27 }
 0x54f   : > { %v3012_v44 = vpop.xlane.xlu1 %3011  ;;  %v3006_v24 = vpop.xlane.xlu0 %3005 }
 0x550   : > { %4396 = vlog2.f32 %v3012_v44 }
 0x551   : > { %4398 = vlog2.f32 %v3006_v24 }
 0x553   : > { %v3008_v61 = vpop.xlane.xlu1 %3007 }
 0x554   : > { %4400 = vlog2.f32 %v3008_v61 }
 0x556   : > { %v4395_v33 = vpop.eup %4394 }
 0x557   : > { %v3074_v52 = vmul.f32 0.6931472, %v4395_v33 }
 0x559   : > { %v3135_v1 = vsub.f32 %v5262_v3, %v3074_v52 }
 0x55a   : > { %v4397_v28 = vpop.eup %4396 }
 0x55b   : > { %v4399_v55 = vpop.eup %4398  ;;  %3167 = vst [vmem:[%s5393_s22 + $0x10] sm:$0xff] %v3135_v1  ;;  %v3076_v37 = vmul.f32 0.6931472, %v4397_v28  ;;  %v3018_v35 = vpop.xlane.xlu0 %3017 }
 0x55c   : > { %v3070_v8 = vmul.f32 0.6931472, %v4399_v55  ;;  %4402 = vlog2.f32 %v3018_v35 }
 0x55d   : > { %v3136_v58 = vsub.f32 %v5270_v53, %v3076_v37  ;;  %v3020_v23 = vpop.xlane.xlu1 %3019 }
 0x55e   : > { %v4401_v39 = vpop.eup %4400  ;;  %v3133_v45 = vsub.f32 %v5265_v47, %v3070_v8  ;;  %4404 = vlog2.f32 %v3020_v23 }
 0x55f   : > { %3168 = vst [vmem:[%s5393_s22 + $0x18] sm:$0xff] %v3136_v58  ;;  %v3072_v4 = vmul.f32 0.6931472, %v4401_v39  ;;  %v3014_v3 = vpop.xlane.xlu0 %3013 }
 0x560   : > { %3165 = vst [vmem:[%s5393_s22] sm:$0xff] %v3133_v45  ;;  %4406 = vlog2.f32 %v3014_v3 }
 0x561   : > { %v3134_v7 = vsub.f32 %v5273_v57, %v3072_v4  ;;  %v3016_v10 = vpop.xlane.xlu1 %3015 }
 0x562   : > { %4408 = vlog2.f32 %v3016_v10 }
 0x563   : > { %3166 = vst [vmem:[%s5393_s22 + $0x8] sm:$0xff] %v3134_v7 }
 0x566   : > { %v4403_v25 = vpop.eup %4402 }
 0x567   : > { %v3082_v6 = vmul.f32 0.6931472, %v4403_v25 }
 0x568   : > { %v4405_v53 = vpop.eup %4404 }
 0x569   : > { %v3139_v9 = vsub.f32 %v5278_v11, %v3082_v6  ;;  %v3084_v47 = vmul.f32 0.6931472, %v4405_v53 }
 0x56a   : > { %v4407_v29 = vpop.eup %4406 }
 0x56b   : > { %3171 = vst [vmem:[%s5393_s22 + $0x30] sm:$0xff] %v3139_v9  ;;  %v3140_v30 = vsub.f32 %v5282_v36, %v3084_v47  ;;  %v3078_v48 = vmul.f32 0.6931472, %v4407_v29  ;;  %v3026_v60 = vpop.xlane.xlu0 %3025 }
 0x56c   : > { %v4409_v40 = vpop.eup %4408  ;;  %4410 = vlog2.f32 %v3026_v60 }
 0x56d   : > { %3172 = vst [vmem:[%s5393_s22 + $0x38] sm:$0xff] %v3140_v30  ;;  %v3137_v57 = vsub.f32 %v5286_v16, %v3078_v48  ;;  %v3080_v2 = vmul.f32 0.6931472, %v4409_v40  ;;  %v3028_v42 = vpop.xlane.xlu1 %3027 }
 0x56e   : > { %4412 = vlog2.f32 %v3028_v42 }
 0x56f   : > { %3169 = vst [vmem:[%s5393_s22 + $0x20] sm:$0xff] %v3137_v57  ;;  %v3138_v11 = vsub.f32 %v5290_v18, %v3080_v2  ;;  %v3022_v59 = vpop.xlane.xlu0 %3021 }
 0x570   : > { %4414 = vlog2.f32 %v3022_v59 }
 0x571   : > { %3170 = vst [vmem:[%s5393_s22 + $0x28] sm:$0xff] %v3138_v11  ;;  %v3024_v62 = vpop.xlane.xlu1 %3023 }
 0x572   : > { %4416 = vlog2.f32 %v3024_v62 }
 0x576   : > { %v4411_v36 = vpop.eup %4410 }
 0x577   : > { %v3090_v0 = vmul.f32 0.6931472, %v4411_v36 }
 0x578   : > { %v4413_v27 = vpop.eup %4412 }
 0x579   : > { %v3143_v44 = vsub.f32 %v5294_v43, %v3090_v0  ;;  %v3092_v16 = vmul.f32 0.6931472, %v4413_v27 }
 0x57a   : > { %v4415_v24 = vpop.eup %4414 }
 0x57b   : > { %3175 = vst [vmem:[%s5393_s22 + $0x50] sm:$0xff] %v3143_v44  ;;  %v3144_v61 = vsub.f32 %v5298_v26, %v3092_v16  ;;  %v3086_v33 = vmul.f32 0.6931472, %v4415_v24  ;;  %v3034_v18 = vpop.xlane.xlu0 %3033 }
 0x57c   : > { %v4417_v52 = vpop.eup %4416  ;;  %4418 = vlog2.f32 %v3034_v18 }
 0x57d   : > { %3176 = vst [vmem:[%s5393_s22 + $0x58] sm:$0xff] %v3144_v61  ;;  %v3141_v1 = vsub.f32 %v5302_v34, %v3086_v33  ;;  %v3088_v28 = vmul.f32 0.6931472, %v4417_v52  ;;  %v3036_v55 = vpop.xlane.xlu1 %3035 }
 0x57e   : > { %4420 = vlog2.f32 %v3036_v55 }
 0x57f   : > { %3173 = vst [vmem:[%s5393_s22 + $0x40] sm:$0xff] %v3141_v1  ;;  %v3142_v43 = vsub.f32 %v5306_v32, %v3088_v28  ;;  %v3030_v37 = vpop.xlane.xlu0 %3029 }
 0x580   : > { %4422 = vlog2.f32 %v3030_v37 }
 0x581   : > { %3174 = vst [vmem:[%s5393_s22 + $0x48] sm:$0xff] %v3142_v43  ;;  %v3032_v35 = vpop.xlane.xlu1 %3031 }
 0x582   : > { %4424 = vlog2.f32 %v3032_v35 }
 0x586   : > { %v4419_v26 = vpop.eup %4418 }
 0x587   : > { %v3098_v8 = vmul.f32 0.6931472, %v4419_v26 }
 0x588   : > { %v4421_v58 = vpop.eup %4420 }
 0x589   : > { %v3147_v23 = vsub.f32 %v5310_v63, %v3098_v8  ;;  %v3100_v34 = vmul.f32 0.6931472, %v4421_v58 }
 0x58a   : > { %v4423_v39 = vpop.eup %4422 }
 0x58b   : > { %3179 = vst [vmem:[%s5393_s22 + $0x70] sm:$0xff] %v3147_v23  ;;  %v3148_v45 = vsub.f32 %v5314_v12, %v3100_v34  ;;  %v3094_v4 = vmul.f32 0.6931472, %v4423_v39  ;;  %v3042_v32 = vpop.xlane.xlu0 %3041 }
 0x58c   : > { %v4425_v3 = vpop.eup %4424  ;;  %4426 = vlog2.f32 %v3042_v32 }
 0x58d   : > { %3180 = vst [vmem:[%s5393_s22 + $0x78] sm:$0xff] %v3148_v45  ;;  %v3145_v7 = vsub.f32 %v5318_v19, %v3094_v4  ;;  %v3096_v10 = vmul.f32 0.6931472, %v4425_v3  ;;  %v3044_v25 = vpop.xlane.xlu1 %3043 }
 0x58e   : > { %4428 = vlog2.f32 %v3044_v25 }
 0x58f   : > { %3177 = vst [vmem:[%s5393_s22 + $0x60] sm:$0xff] %v3145_v7  ;;  %v3146_v63 = vsub.f32 %v5322_v54, %v3096_v10  ;;  %v3038_v6 = vpop.xlane.xlu0 %3037 }
 0x590   : > { %4430 = vlog2.f32 %v3038_v6 }
 0x591   : > { %3178 = vst [vmem:[%s5393_s22 + $0x68] sm:$0xff] %v3146_v63  ;;  %v3040_v53 = vpop.xlane.xlu1 %3039 }
 0x592   : > { %4432 = vlog2.f32 %v3040_v53 }
 0x596   : > { %v4427_v12 = vpop.eup %4426 }
 0x597   : > { %v3106_v9 = vmul.f32 0.6931472, %v4427_v12 }
 0x598   : > { %v4429_v47 = vpop.eup %4428 }
 0x599   : > { %v3151_v29 = vsub.f32 %v5326_v49, %v3106_v9  ;;  %v3108_v19 = vmul.f32 0.6931472, %v4429_v47 }
 0x59a   : > { %v4431_v30 = vpop.eup %4430 }
 0x59b   : > { %3183 = vst [vmem:[%s5393_s22 + $0x90] sm:$0xff] %v3151_v29  ;;  %v3152_v48 = vsub.f32 %v5330_v21, %v3108_v19  ;;  %v3102_v60 = vmul.f32 0.6931472, %v4431_v30  ;;  %v3050_v54 = vpop.xlane.xlu0 %3049 }
 0x59c   : > { %v4433_v40 = vpop.eup %4432  ;;  %4434 = vlog2.f32 %v3050_v54 }
 0x59d   : > { %3184 = vst [vmem:[%s5393_s22 + $0x98] sm:$0xff] %v3152_v48  ;;  %v3149_v57 = vsub.f32 %v5334_v38, %v3102_v60  ;;  %v3104_v2 = vmul.f32 0.6931472, %v4433_v40  ;;  %v3052_v42 = vpop.xlane.xlu1 %3051 }
 0x59e   : > { %4436 = vlog2.f32 %v3052_v42 }
 0x59f   : > { %3181 = vst [vmem:[%s5393_s22 + $0x80] sm:$0xff] %v3149_v57  ;;  %v3150_v49 = vsub.f32 %v5338_v17, %v3104_v2  ;;  %v3046_v11 = vpop.xlane.xlu0 %3045 }
 0x5a0   : > { %4438 = vlog2.f32 %v3046_v11 }
 0x5a1   : > { %3182 = vst [vmem:[%s5393_s22 + $0x88] sm:$0xff] %v3150_v49  ;;  %v3048_v59 = vpop.xlane.xlu1 %3047 }
 0x5a2   : > { %4440 = vlog2.f32 %v3048_v59 }
 0x5a6   : > { %v4435_v21 = vpop.eup %4434 }
 0x5a7   : > { %v3114_v62 = vmul.f32 0.6931472, %v4435_v21 }
 0x5a8   : > { %v4437_v36 = vpop.eup %4436 }
 0x5a9   : > { %v3155_v0 = vsub.f32 %v5342_v15, %v3114_v62  ;;  %v3116_v38 = vmul.f32 0.6931472, %v4437_v36 }
 0x5aa   : > { %v4439_v27 = vpop.eup %4438 }
 0x5ab   : > { %3187 = vst [vmem:[%s5393_s22 + $0xb0] sm:$0xff] %v3155_v0  ;;  %v3156_v44 = vsub.f32 %v5346_v56, %v3116_v38  ;;  %v3110_v16 = vmul.f32 0.6931472, %v4439_v27  ;;  %v3058_v17 = vpop.xlane.xlu0 %3057 }
 0x5ac   : > { %v4441_v24 = vpop.eup %4440  ;;  %4442 = vlog2.f32 %v3058_v17 }
 0x5ad   : > { %3188 = vst [vmem:[%s5393_s22 + $0xb8] sm:$0xff] %v3156_v44  ;;  %v3153_v61 = vsub.f32 %v5350_v31, %v3110_v16  ;;  %v3112_v33 = vmul.f32 0.6931472, %v4441_v24  ;;  %v3060_v18 = vpop.xlane.xlu1 %3059 }
 0x5ae   : > { %4444 = vlog2.f32 %v3060_v18 }
 0x5af   : > { %3185 = vst [vmem:[%s5393_s22 + $0xa0] sm:$0xff] %v3153_v61  ;;  %v3154_v15 = vsub.f32 %v5354_v22, %v3112_v33  ;;  %v3054_v52 = vpop.xlane.xlu0 %3053 }
 0x5b0   : > { %4446 = vlog2.f32 %v3054_v52 }
 0x5b1   : > { %3186 = vst [vmem:[%s5393_s22 + $0xa8] sm:$0xff] %v3154_v15  ;;  %v3056_v1 = vpop.xlane.xlu1 %3055 }
 0x5b2   : > { %4448 = vlog2.f32 %v3056_v1 }
 0x5b6   : > { %v4443_v56 = vpop.eup %4442 }
 0x5b7   : > { %v3122_v28 = vmul.f32 0.6931472, %v4443_v56 }
 0x5b8   : > { %v4445_v55 = vpop.eup %4444 }
 0x5b9   : > { %v3159_v43 = vsub.f32 %v5358_v41, %v3122_v28  ;;  %v3124_v31 = vmul.f32 0.6931472, %v4445_v55 }
 0x5ba   : > { %v4447_v37 = vpop.eup %4446 }
 0x5bb   : > { %3191 = vst [vmem:[%s5393_s22 + $0xd0] sm:$0xff] %v3159_v43  ;;  %v3160_v35 = vsub.f32 %v5362_v46, %v3124_v31  ;;  %v3118_v26 = vmul.f32 0.6931472, %v4447_v37 }
 0x5bc   : > { %v4449_v22 = vpop.eup %4448  ;;  %v3062_v8 = vpop.xlane.xlu0 %3061 }
 0x5bd   : > { %3192 = vst [vmem:[%s5393_s22 + $0xd8] sm:$0xff] %v3160_v35  ;;  %v3157_v58 = vsub.f32 %v5366_v5, %v3118_v26  ;;  %v3120_v23 = vmul.f32 0.6931472, %v4449_v22  ;;  %4450 = vlog2.f32 %v3062_v8 }
 0x5be   : > { %v3064_v34 = vpop.xlane.xlu1 %3063 }
 0x5bf   : > { %3189 = vst [vmem:[%s5393_s22 + $0xc0] sm:$0xff] %v3157_v58  ;;  %v3158_v39 = vsub.f32 %v5370_v51, %v3120_v23  ;;  %4452 = vlog2.f32 %v3064_v34 }
 0x5c0   : > { %v3066_v41 = vpop.xlane.xlu0 %3065 }
 0x5c1   : > { %3190 = vst [vmem:[%s5393_s22 + $0xc8] sm:$0xff] %v3158_v39  ;;  %4454 = vlog2.f32 %v3066_v41 }
 0x5c2   : > { %v3068_v46 = vpop.xlane.xlu1 %3067 }
 0x5c3   : > { %4456 = vlog2.f32 %v3068_v46 }
 0x5c7   : > { %v4451_v45 = vpop.eup %4450 }
 0x5c8   : > { %v3126_v4 = vmul.f32 0.6931472, %v4451_v45 }
 0x5c9   : > { %v4453_v32 = vpop.eup %4452 }
 0x5ca   : > { %v3161_v5 = vsub.f32 %v5374_v13, %v3126_v4  ;;  %v3128_v3 = vmul.f32 0.6931472, %v4453_v32 }
 0x5cb   : > { %v4455_v7 = vpop.eup %4454 }
 0x5cc   : > { %3193 = vst [vmem:[%s5393_s22 + $0xe0] sm:$0xff] %v3161_v5  ;;  %v3162_v10 = vsub.f32 %v5378_v20, %v3128_v3  ;;  %v3130_v51 = vmul.f32 0.6931472, %v4455_v7 }
 0x5cd   : > { %v4457_v25 = vpop.eup %4456 }
 0x5ce   : > { %3194 = vst [vmem:[%s5393_s22 + $0xe8] sm:$0xff] %v3162_v10  ;;  %v3163_v63 = vsub.f32 %v5382_v14, %v3130_v51  ;;  %v3132_v6 = vmul.f32 0.6931472, %v4457_v25 }
 0x5d0   : > { %3195 = vst [vmem:[%s5393_s22 + $0xf0] sm:$0xff] %v3163_v63  ;;  %v3164_v53 = vsub.f32 %v5386_v50, %v3132_v6 }
 0x5d2   : > { %3196 = vst [vmem:[%s5393_s22 + $0xf8] sm:$0xff] %v3164_v53 }
 0x5d3 PF: > { %s15_s18 = sadd.s32 1, %s4464_s18  }
 0x5d4   : > { %p12_p4 = scmp.ge.s32.totalorder %s15_s18, 4  }
 0x5d6   :  { %14 = sbr.rel (!%p12_p4) target bundleno = 1 (0x1), region = 71 }

</bundles_post_ra>
